<compile_context>
chip_gen: v7x
topology: tpu7x:2x2x1
jax: 0.10.0
libtpu: 0.0.40
codegen_flags: <defaults>
</compile_context>

<pallas_src>
import functools

import jax
import jax.numpy as jnp
import numpy as np
from jax.experimental import pallas as pl
from jax.experimental.pallas import tpu as pltpu

EPS = 1e-5
VMEM_LIMIT_BYTES = 48 * 1024 * 1024     # safe on v5e/v6e (128 MiB) and v7x (64 MiB physical)
VMEM_TILE_BUDGET = 28 * 1024 * 1024     # target for the per-call double-buffered estimate


def _pick_tile_h(N, H, W, Cin, Cmid, Cout, elem_bytes):
    """Largest divisor of H whose double-buffered tile footprint fits the VMEM budget,
    preferring tile sizes that keep the grid >= 8 (pipeline overlap + 2 TCs on v7x)."""
    NR = N * H
    f32 = 4

    def est(th):
        tw = th * W
        a = 2 * (tw * Cin * elem_bytes + tw * Cmid * elem_bytes + 2 * Cmid * f32)
        b = (2 * ((tw + W) * Cmid * elem_bytes
                  + tw * 4 * Cmid * elem_bytes + 2 * 4 * Cmid * f32)
             + (tw + W + 8) * Cmid * elem_bytes)
        c = 2 * (tw * 4 * Cmid * elem_bytes + tw * 4 * Cout * elem_bytes
                 + 2 * 4 * Cout * f32)
        return max(a, b, c)

    divisors = [d for d in range(1, H + 1) if H % d == 0]
    fitting = [d for d in divisors if est(d) <= VMEM_TILE_BUDGET] or [1]
    pref = [d for d in fitting if NR // d >= 8]
    return max(pref) if pref else max(fitting)


def _affine_from_sums(sums, count, gamma, beta):
    """(2, C) [sum, sum_sq] -> (2, C) [scale, shift] for train-mode BN (biased variance)."""
    mean = sums[0] / count
    var = jnp.maximum(sums[1] / count - mean * mean, 0.0)
    scale = gamma * jax.lax.rsqrt(var + EPS)
    shift = beta - mean * scale
    return jnp.stack([scale, shift], axis=0)


@functools.partial(jax.jit, static_argnames=("tile_h", "use_bf16"))
def decoder_block(x_nchw, params, tile_h=None, use_bf16=True):
    N, Cin, H, W = x_nchw.shape
    Cmid = params["w1"].shape[1]
    Cout = params["w3"].shape[1]
    NR = N * H                 # total image rows (tiling axis)
    M = N * H * W              # total input pixels

    mm_dtype = jnp.bfloat16 if use_bf16 else jnp.float32
    store_dtype = mm_dtype     # HBM storage of inter-stage activations
    prec = None if use_bf16 else jax.lax.Precision.HIGHEST
    elem_bytes = 2 if use_bf16 else 4

    if tile_h is None:
        tile_h = _pick_tile_h(N, H, W, Cin, Cmid, Cout, elem_bytes)
    if H % tile_h != 0:
        raise ValueError("tile_h must divide H")
    T = NR // tile_h           # grid size
    TW = tile_h * W            # pixels per tile
    blocks_per_img = H // tile_h

    def mxu(a, b):             # narrow operands, f32 accumulation
        return jnp.dot(a.astype(mm_dtype), b.astype(mm_dtype),
                       preferred_element_type=jnp.float32, precision=prec)

    # ------------- weights (channels-last matmul form; conv biases cancel in train-BN) -----
    C = Cmid
    w1 = params["w1"].astype(mm_dtype)                                     # (Cin, Cmid)
    wk = lambda ky, kx: params["wd"][ky * 3 + kx]                          # (Cmid, Cmid)
    z = jnp.zeros((C, C), jnp.float32)
    # output-parity column layout [ee | eo | oe | oo]; R/D/Q padded to full width so the
    # combine is pure full-width adds (no sub-lane slices / concatenate).
    w_same = jnp.concatenate([wk(1, 1), wk(1, 2), wk(2, 1), wk(2, 2)], axis=1).astype(mm_dtype)
    w_right = jnp.concatenate([z, wk(1, 0), z, wk(2, 0)], axis=1).astype(mm_dtype)
    w_down = jnp.concatenate([z, z, wk(0, 1), wk(0, 2)], axis=1).astype(mm_dtype)
    w_diag = jnp.concatenate([z, z, z, wk(0, 0)], axis=1).astype(mm_dtype)
    # conv3 as a single matmul over all 4 parity blocks via a block-diagonal weight
    w3_blk = jnp.kron(jnp.eye(4, dtype=jnp.float32), params["w3"]).astype(mm_dtype)

    # NCHW -> channels-last rows (N*H, W, Cin), stored narrow for the mem-bound chain
    x = jnp.transpose(x_nchw, (0, 2, 3, 1)).astype(store_dtype).reshape(NR, W, Cin)

    cparams = pltpu.CompilerParams(
        dimension_semantics=("parallel",),      # shard row-tiles across TensorCores
        vmem_limit_bytes=VMEM_LIMIT_BYTES,
    )

    def row_spec(c):
        return pl.BlockSpec((tile_h, W, c), lambda i: (i, 0, 0))

    def stat_spec(c):
        return pl.BlockSpec((1, 2, c), lambda i: (i, 0, 0))

    def full_spec(*shape):
        nd = len(shape)
        return pl.BlockSpec(shape, lambda i, _nd=nd: (0,) * _nd)

    # --------------------- call A: conv1 (1x1) + BN1 partial sums --------------------------
    def conv1_kernel(x_ref, w1_ref, y1_ref, s1_ref):
        y1 = mxu(x_ref[...].reshape(TW, Cin), w1_ref[...])                 # (TW, Cmid) f32
        y1_ref[...] = y1.reshape(tile_h, W, Cmid).astype(y1_ref.dtype)
        s1_ref[...] = jnp.stack([jnp.sum(y1, axis=0),
                                 jnp.sum(y1 * y1, axis=0)])[None]

    y1, s1p = pl.pallas_call(
        conv1_kernel,
        grid=(T,),
        in_specs=[row_spec(Cin), full_spec(Cin, Cmid)],
        out_specs=(row_spec(Cmid), stat_spec(Cmid)),
        out_shape=(jax.ShapeDtypeStruct((NR, W, Cmid), store_dtype),
                   jax.ShapeDtypeStruct((T, 2, Cmid), jnp.float32)),
        compiler_params=cparams,
    )(x, w1)

    a1 = _affine_from_sums(s1p.sum(axis=0), float(M),
                           params["g1"].reshape(-1), params["beta1"].reshape(-1))

    # ---- call B: BN1+ReLU + ConvTranspose2d(3, s=2, p=1, op=1) + BN2 partial sums ----------
    # Output pixel (2*iy+py, 2*ix+px); 9 taps fused into 4 matmuls grouped by input shift,
    # each producing the full [ee|eo|oe|oo] lane layout (zero-padded weights).
    def deconv_kernel(y1_ref, halo_ref, a1_ref, ws_ref, wr_ref, wd_ref, wq_ref,
                      y2_ref, s2_ref, hext_ref):
        i = pl.program_id(0)
        scale = a1_ref[0:1, :]
        shift = a1_ref[1:2, :]
        h = jnp.maximum(
            y1_ref[...].astype(jnp.float32).reshape(TW, Cmid) * scale + shift, 0.0)
        halo = jnp.maximum(
            halo_ref[...].astype(jnp.float32).reshape(W, Cmid) * scale + shift, 0.0)
        # halo row only valid if the next image row belongs to the same image
        last_of_image = (i % blocks_per_img) == (blocks_per_img - 1)
        halo = jnp.where(last_of_image, 0.0, halo)

        # extended activation scratch (narrow dtype): [tile | halo row | single zero row]
        hext_ref[0:TW, :] = h.astype(hext_ref.dtype)
        hext_ref[TW:TW + W, :] = halo.astype(hext_ref.dtype)
        hext_ref[TW + W:TW + W + 1, :] = jnp.zeros((1, Cmid), hext_ref.dtype)

        # pixels in the last image column have no right / diagonal neighbour
        ix = jax.lax.broadcasted_iota(jnp.int32, (TW, 1), 0) % W
        not_last_col = ix != (W - 1)

        S = mxu(hext_ref[0:TW, :], ws_ref[...])                # taps (1,1)(1,2)(2,1)(2,2)
        R = mxu(hext_ref[1:TW + 1, :], wr_ref[...])            # taps (1,0)(2,0)   @ ix+1
        D = mxu(hext_ref[W:TW + W, :], wd_ref[...])            # taps (0,1)(0,2)   @ iy+1
        Q = mxu(hext_ref[W + 1:TW + W + 1, :], wq_ref[...])    # tap  (0,0)        @ iy+1,ix+1
        y2 = S + D + jnp.where(not_last_col, R + Q, 0.0)       # lane-packed (TW, 4*Cmid)

        y2_ref[...] = y2.reshape(tile_h, W, 4 * Cmid).astype(y2_ref.dtype)
        s2_ref[...] = jnp.stack([jnp.sum(y2, axis=0),
                                 jnp.sum(y2 * y2, axis=0)])[None]

    halo_spec = pl.BlockSpec(
        (1, W, Cmid), lambda i: (jnp.minimum((i + 1) * tile_h, NR - 1), 0, 0))

    y2, s2p = pl.pallas_call(
        deconv_kernel,
        grid=(T,),
        in_specs=[row_spec(Cmid), halo_spec, full_spec(2, Cmid),
                  full_spec(Cmid, 4 * Cmid), full_spec(Cmid, 4 * Cmid),
                  full_spec(Cmid, 4 * Cmid), full_spec(Cmid, 4 * Cmid)],
        out_specs=(row_spec(4 * Cmid), stat_spec(4 * Cmid)),
        out_shape=(jax.ShapeDtypeStruct((NR, W, 4 * Cmid), store_dtype),
                   jax.ShapeDtypeStruct((T, 2, 4 * Cmid), jnp.float32)),
        scratch_shapes=[pltpu.VMEM((TW + W + 8, Cmid), mm_dtype)],
        compiler_params=cparams,
    )(y1, y1, a1, w_same, w_right, w_down, w_diag)

    s2 = s2p.sum(axis=0).reshape(2, 4, Cmid).sum(axis=1)        # fold the 4 parity branches
    a2 = jnp.tile(_affine_from_sums(s2, float(4 * M),
                                    params["g2"].reshape(-1),
                                    params["beta2"].reshape(-1)), (1, 4))

    # ---------------- call C: BN2+ReLU + conv3 (1x1) + BN3 partial sums ---------------------
    def conv3_kernel(y2_ref, a2_ref, w3_ref, y3_ref, s3_ref):
        scale = a2_ref[0:1, :]
        shift = a2_ref[1:2, :]
        h2 = jnp.maximum(
            y2_ref[...].astype(jnp.float32).reshape(TW, 4 * Cmid) * scale + shift, 0.0)
        y3 = mxu(h2, w3_ref[...])                               # one (TW,4Cmid)x(4Cmid,4Cout)
        y3_ref[...] = y3.reshape(tile_h, W, 4 * Cout).astype(y3_ref.dtype)
        s3_ref[...] = jnp.stack([jnp.sum(y3, axis=0),
                                 jnp.sum(y3 * y3, axis=0)])[None]

    y3, s3p = pl.pallas_call(
        conv3_kernel,
        grid=(T,),
        in_specs=[row_spec(4 * Cmid), full_spec(2, 4 * Cmid), full_spec(4 * Cmid, 4 * Cout)],
        out_specs=(row_spec(4 * Cout), stat_spec(4 * Cout)),
        out_shape=(jax.ShapeDtypeStruct((NR, W, 4 * Cout), store_dtype),
                   jax.ShapeDtypeStruct((T, 2, 4 * Cout), jnp.float32)),
        compiler_params=cparams,
    )(y2, a2, w3_blk)

    s3 = s3p.sum(axis=0).reshape(2, 4, Cout).sum(axis=1)
    a3 = _affine_from_sums(s3, float(4 * M),
                           params["g3"].reshape(-1), params["beta3"].reshape(-1))

    # BN3 + ReLU fused by XLA into the parity-unpack + NHWC->NCHW permutation epilogue
    out6 = y3.reshape(N, H, W, 2, 2, Cout).astype(jnp.float32)  # (n, iy, ix, py, px, c)
    out6 = jnp.maximum(out6 * a3[0] + a3[1], 0.0)
    out = jnp.transpose(out6, (0, 5, 1, 3, 2, 4)).reshape(N, Cout, 2 * H, 2 * W)
    return out


# --------------------------------- pure-JAX reference -------------------------------------
def reference(x_nchw, params):
    Cmid = params["w1"].shape[1]
    HIGH = jax.lax.Precision.HIGHEST
    x = jnp.transpose(x_nchw, (0, 2, 3, 1)).astype(jnp.float32)

    def bn_relu(y, g, b):
        mean = jnp.mean(y, axis=(0, 1, 2), keepdims=True)
        var = jnp.mean(jnp.square(y - mean), axis=(0, 1, 2), keepdims=True)
        return jnp.maximum((y - mean) * jax.lax.rsqrt(var + EPS) * g + b, 0.0)

    h1 = bn_relu(jnp.einsum("nhwi,io->nhwo", x, params["w1"], precision=HIGH)
                 + params["b1"][0], params["g1"][0], params["beta1"][0])

    # transposed conv == dilated conv with a spatially-flipped kernel
    wd = params["wd"].reshape(3, 3, Cmid, Cmid)       # (ky, kx, ci, co) == HWIO
    wd_flip = wd[::-1, ::-1, :, :]
    h2 = jax.lax.conv_general_dilated(
        h1, wd_flip, window_strides=(1, 1), padding=[(1, 2), (1, 2)],
        lhs_dilation=(2, 2), dimension_numbers=("NHWC", "HWIO", "NHWC"),
        precision=HIGH) + params["bd"][0]
    h2 = bn_relu(h2, params["g2"][0], params["beta2"][0])

    h3 = jnp.einsum("nhwi,io->nhwo", h2, params["w3"], precision=HIGH) + params["b3"][0]
    h3 = bn_relu(h3, params["g3"][0], params["beta3"][0])
    return jnp.transpose(h3, (0, 3, 1, 2))


def make_params(key, in_channels, n_filters):
    Cin, Cmid, Cout = in_channels, in_channels // 4, n_filters
    ks = jax.random.split(key, 12)
    u = lambda k, shape, s=0.5: jax.random.uniform(k, shape, jnp.float32, -s, s)
    # conv1: torch weight (Cmid, Cin, 1, 1) -> stored as (Cin, Cmid) matmul matrix
    w1 = u(ks[0], (Cin, Cmid))
    b1 = u(ks[1], (1, Cmid))
    g1 = 1.0 + u(ks[2], (1, Cmid), 0.2)
    beta1 = u(ks[3], (1, Cmid), 0.2)
    # deconv2: torch weight (Cmid_in, Cmid_out, 3, 3) -> stored as (9, Cmid, Cmid), idx ky*3+kx
    wd_t = u(ks[4], (Cmid, Cmid, 3, 3))
    wd = jnp.transpose(wd_t, (2, 3, 0, 1)).reshape(9, Cmid, Cmid)
    bd = u(ks[5], (1, Cmid))
    g2 = 1.0 + u(ks[6], (1, Cmid), 0.2)
    beta2 = u(ks[7], (1, Cmid), 0.2)
    # conv3: torch weight (Cout, Cmid, 1, 1) -> stored as (Cmid, Cout)
    w3 = u(ks[8], (Cmid, Cout))
    b3 = u(ks[9], (1, Cout))
    g3 = 1.0 + u(ks[10], (1, Cout), 0.2)
    beta3 = u(ks[11], (1, Cout), 0.2)
    return dict(w1=w1, b1=b1, g1=g1, beta1=beta1,
                wd=wd, bd=bd, g2=g2, beta2=beta2,
                w3=w3, b3=b3, g3=g3, beta3=beta3)


if __name__ == "__main__":
    N, Cin, H, W = 2, 16, 16, 16
    n_filters = 8
    key = jax.random.PRNGKey(0)
    kx, kp = jax.random.split(key)
    x = jax.random.normal(kx, (N, Cin, H, W), jnp.float32)
    params = make_params(kp, Cin, n_filters)

    ref = jax.block_until_ready(reference(x, params))

    # tight numerical check: f32/HIGHEST MXU + f32 storage, small tiles (interior halos)
    out_f32 = jax.block_until_ready(decoder_block(x, params, tile_h=4, use_bf16=False))
    assert out_f32.shape == (N, n_filters, 2 * H, 2 * W)
    np.testing.assert_allclose(np.asarray(out_f32), np.asarray(ref), rtol=2e-3, atol=2e-3)

    # performance path: VMEM-derived tile size, bf16 storage + MXU operands (f32 accumulation)
    out_bf16 = jax.block_until_ready(decoder_block(x, params))
    assert out_bf16.shape == (N, n_filters, 2 * H, 2 * W)
    np.testing.assert_allclose(np.asarray(out_bf16), np.asarray(ref), rtol=1e-1, atol=1e-1)

    print("KERNEL_OK")
</pallas_src>

<mosaic_0001>
module attributes {stable_mosaic.version = 11 : i64} {
  func.func @conv1_kernel(%arg0: i32, %arg1: memref<4x16x16xf32, #tpu.memory_space<vmem>>, %arg2: memref<16x4xf32, #tpu.memory_space<vmem>>, %arg3: memref<4x16x4xf32, #tpu.memory_space<vmem>>, %arg4: memref<1x2x4xf32, #tpu.memory_space<vmem>>) attributes {dimension_semantics = [#tpu.dimension_semantics<parallel>], iteration_bounds = array<i64: 8>, scalar_prefetch = 0 : i64, scratch_operands = 0 : i64, tpu.core_type = #tpu.core_type<tc>, window_params = [{transform_indices = @transform_0, window_bounds = array<i64: 4, 16, 16>}, {pipeline_mode = #tpu.pipeline_mode<synchronous>, transform_indices = @transform_1, window_bounds = array<i64: 16, 4>}, {transform_indices = @transform_2, window_bounds = array<i64: 4, 16, 4>}, {transform_indices = @transform_3, window_bounds = array<i64: 1, 2, 4>}]} {
    %c0 = arith.constant 0 : index
    %c0_0 = arith.constant 0 : index
    %c0_1 = arith.constant 0 : index
    %0 = vector.load %arg1[%c0, %c0_0, %c0_1] : memref<4x16x16xf32, #tpu.memory_space<vmem>>, vector<4x16x16xf32>
    %1 = vector.shape_cast %0 : vector<4x16x16xf32> to vector<64x16xf32>
    %c0_2 = arith.constant 0 : index
    %c0_3 = arith.constant 0 : index
    %2 = vector.load %arg2[%c0_2, %c0_3] : memref<16x4xf32, #tpu.memory_space<vmem>>, vector<16x4xf32>
    %cst = arith.constant dense<0.000000e+00> : vector<64x4xf32>
    %3 = tpu.matmul %1, %2, %cst {dimension_numbers = #tpu.dot_dimension_numbers<[1], [0], [0], [1], [0, 0, 1, 1], [], []>, precision = #tpu.contract_precision<fp32>} : vector<64x16xf32>, vector<16x4xf32>, vector<64x4xf32> -> vector<64x4xf32>
    %4 = vector.shape_cast %3 : vector<64x4xf32> to vector<4x16x4xf32>
    %c0_4 = arith.constant 0 : index
    %c0_5 = arith.constant 0 : index
    %c0_6 = arith.constant 0 : index
    %5 = vector.load %arg3[%c0_4, %c0_5, %c0_6] : memref<4x16x4xf32, #tpu.memory_space<vmem>>, vector<4x16x4xf32>
    tpu.vector_store %arg3[%c0_4, %c0_5, %c0_6], %4 {strides = array<i32>} : memref<4x16x4xf32, #tpu.memory_space<vmem>>, vector<4x16x4xf32>,
    %cst_7 = arith.constant dense<0.000000e+00> : vector<4xf32>
    %6 = vector.multi_reduction <add>, %3, %cst_7 [0] : vector<64x4xf32> to vector<4xf32>
    %7 = arith.mulf %3, %3 : vector<64x4xf32>
    %cst_8 = arith.constant dense<0.000000e+00> : vector<4xf32>
    %8 = vector.multi_reduction <add>, %7, %cst_8 [0] : vector<64x4xf32> to vector<4xf32>
    %9 = vector.shape_cast %6 : vector<4xf32> to vector<1x4xf32>
    %10 = vector.shape_cast %8 : vector<4xf32> to vector<1x4xf32>
    %11 = tpu.concatenate %9, %10 in 0 : vector<1x4xf32>, vector<1x4xf32> -> vector<2x4xf32>
    %12 = vector.shape_cast %11 : vector<2x4xf32> to vector<1x2x4xf32>
    %c0_9 = arith.constant 0 : index
    %c0_10 = arith.constant 0 : index
    %c0_11 = arith.constant 0 : index
    %13 = vector.load %arg4[%c0_9, %c0_10, %c0_11] : memref<1x2x4xf32, #tpu.memory_space<vmem>>, vector<1x2x4xf32>
    tpu.vector_store %arg4[%c0_9, %c0_10, %c0_11], %12 {strides = array<i32>} : memref<1x2x4xf32, #tpu.memory_space<vmem>>, vector<1x2x4xf32>,
    return
  }
  func.func @transform_0(%arg0: i32) -> (i32, i32, i32) {
    %c0_i32 = arith.constant 0 : i32
    %c0_i32_0 = arith.constant 0 : i32
    %c0_i32_1 = arith.constant 0 : i32
    return %arg0, %c0_i32, %c0_i32_0 : i32, i32, i32
  }
  func.func @transform_1(%arg0: i32) -> (i32, i32) {
    %c0_i32 = arith.constant 0 : i32
    %c0_i32_0 = arith.constant 0 : i32
    %c0_i32_1 = arith.constant 0 : i32
    return %c0_i32, %c0_i32_0 : i32, i32
  }
  func.func @transform_2(%arg0: i32) -> (i32, i32, i32) {
    %c0_i32 = arith.constant 0 : i32
    %c0_i32_0 = arith.constant 0 : i32
    %c0_i32_1 = arith.constant 0 : i32
    return %arg0, %c0_i32, %c0_i32_0 : i32, i32, i32
  }
  func.func @transform_3(%arg0: i32) -> (i32, i32, i32) {
    %c0_i32 = arith.constant 0 : i32
    %c0_i32_0 = arith.constant 0 : i32
    %c0_i32_1 = arith.constant 0 : i32
    return %arg0, %c0_i32, %c0_i32_0 : i32, i32, i32
  }
}

module attributes {stable_mosaic.version = 11 : i64} {
  func.func @deconv_kernel(%arg0: i32, %arg1: memref<4x16x4xf32, #tpu.memory_space<vmem>>, %arg2: memref<1x16x4xf32, #tpu.memory_space<vmem>>, %arg3: memref<2x4xf32, #tpu.memory_space<vmem>>, %arg4: memref<4x16xf32, #tpu.memory_space<vmem>>, %arg5: memref<4x16xf32, #tpu.memory_space<vmem>>, %arg6: memref<4x16xf32, #tpu.memory_space<vmem>>, %arg7: memref<4x16xf32, #tpu.memory_space<vmem>>, %arg8: memref<4x16x16xf32, #tpu.memory_space<vmem>>, %arg9: memref<1x2x16xf32, #tpu.memory_space<vmem>>, %arg10: memref<88x4xf32, #tpu.memory_space<vmem>>) attributes {dimension_semantics = [#tpu.dimension_semantics<parallel>], iteration_bounds = array<i64: 8>, scalar_prefetch = 0 : i64, scratch_operands = 1 : i64, tpu.core_type = #tpu.core_type<tc>, window_params = [{transform_indices = @transform_0, window_bounds = array<i64: 4, 16, 4>}, {transform_indices = @transform_1, window_bounds = array<i64: 1, 16, 4>}, {pipeline_mode = #tpu.pipeline_mode<synchronous>, transform_indices = @transform_2, window_bounds = array<i64: 2, 4>}, {pipeline_mode = #tpu.pipeline_mode<synchronous>, transform_indices = @transform_3, window_bounds = array<i64: 4, 16>}, {pipeline_mode = #tpu.pipeline_mode<synchronous>, transform_indices = @transform_4, window_bounds = array<i64: 4, 16>}, {pipeline_mode = #tpu.pipeline_mode<synchronous>, transform_indices = @transform_5, window_bounds = array<i64: 4, 16>}, {pipeline_mode = #tpu.pipeline_mode<synchronous>, transform_indices = @transform_6, window_bounds = array<i64: 4, 16>}, {transform_indices = @transform_7, window_bounds = array<i64: 4, 16, 16>}, {transform_indices = @transform_8, window_bounds = array<i64: 1, 2, 16>}]} {
    %c0 = arith.constant 0 : index
    %c0_0 = arith.constant 0 : index
    %0 = vector.load %arg3[%c0, %c0_0] : memref<2x4xf32, #tpu.memory_space<vmem>>, vector<1x4xf32>
    %c1 = arith.constant 1 : index
    %c0_1 = arith.constant 0 : index
    %1 = vector.load %arg3[%c1, %c0_1] : memref<2x4xf32, #tpu.memory_space<vmem>>, vector<1x4xf32>
    %c0_2 = arith.constant 0 : index
    %c0_3 = arith.constant 0 : index
    %c0_4 = arith.constant 0 : index
    %2 = vector.load %arg1[%c0_2, %c0_3, %c0_4] : memref<4x16x4xf32, #tpu.memory_space<vmem>>, vector<4x16x4xf32>
    %3 = vector.shape_cast %2 : vector<4x16x4xf32> to vector<64x4xf32>
    %4 = vector.broadcast %0 : vector<1x4xf32> to vector<64x4xf32>
    %5 = arith.mulf %3, %4 : vector<64x4xf32>
    %6 = vector.broadcast %1 : vector<1x4xf32> to vector<64x4xf32>
    %7 = arith.addf %5, %6 : vector<64x4xf32>
    %cst = arith.constant 0.000000e+00 : f32
    %8 = vector.broadcast %cst : f32 to vector<64x4xf32>
    %9 = arith.maximumf %7, %8 : vector<64x4xf32>
    %c0_5 = arith.constant 0 : index
    %c0_6 = arith.constant 0 : index
    %c0_7 = arith.constant 0 : index
    %10 = vector.load %arg2[%c0_5, %c0_6, %c0_7] : memref<1x16x4xf32, #tpu.memory_space<vmem>>, vector<1x16x4xf32>
    %11 = vector.shape_cast %10 : vector<1x16x4xf32> to vector<16x4xf32>
    %12 = vector.broadcast %0 : vector<1x4xf32> to vector<16x4xf32>
    %13 = arith.mulf %11, %12 : vector<16x4xf32>
    %14 = vector.broadcast %1 : vector<1x4xf32> to vector<16x4xf32>
    %15 = arith.addf %13, %14 : vector<16x4xf32>
    %cst_8 = arith.constant 0.000000e+00 : f32
    %16 = vector.broadcast %cst_8 : f32 to vector<16x4xf32>
    %17 = arith.maximumf %15, %16 : vector<16x4xf32>
    %c4_i32 = arith.constant 4 : i32
    %c0_i32 = arith.constant 0 : i32
    %18 = arith.cmpi eq, %c4_i32, %c0_i32 : i32
    %c1_i32 = arith.constant 1 : i32
    %19 = arith.select %18, %c1_i32, %c4_i32 : i32
    %20 = arith.remsi %arg0, %19 : i32
    %c0_i32_9 = arith.constant 0 : i32
    %21 = arith.cmpi ne, %20, %c0_i32_9 : i32
    %c0_i32_10 = arith.constant 0 : i32
    %22 = arith.cmpi slt, %20, %c0_i32_10 : i32
    %c0_i32_11 = arith.constant 0 : i32
    %23 = arith.cmpi slt, %19, %c0_i32_11 : i32
    %24 = arith.xori %22, %23 : i1
    %25 = arith.andi %24, %21 : i1
    %26 = arith.addi %20, %19 : i32
    %27 = arith.select %25, %26, %20 : i32
    %c3_i32 = arith.constant 3 : i32
    %28 = arith.cmpi eq, %27, %c3_i32 : i32
    %cst_12 = arith.constant 0.000000e+00 : f32
    %29 = vector.broadcast %cst_12 : f32 to vector<16x4xf32>
    %30 = arith.select %28, %29, %17 : vector<16x4xf32>
    %c0_13 = arith.constant 0 : index
    %c0_14 = arith.constant 0 : index
    %31 = vector.load %arg10[%c0_13, %c0_14] : memref<88x4xf32, #tpu.memory_space<vmem>>, vector<64x4xf32>
    tpu.vector_store %arg10[%c0_13, %c0_14], %9 {strides = array<i32>} : memref<88x4xf32, #tpu.memory_space<vmem>>, vector<64x4xf32>,
    %c64 = arith.constant 64 : index
    %c0_15 = arith.constant 0 : index
    %32 = vector.load %arg10[%c64, %c0_15] : memref<88x4xf32, #tpu.memory_space<vmem>>, vector<16x4xf32>
    tpu.vector_store %arg10[%c64, %c0_15], %30 {strides = array<i32>} : memref<88x4xf32, #tpu.memory_space<vmem>>, vector<16x4xf32>,
    %cst_16 = arith.constant 0.000000e+00 : f32
    %33 = vector.broadcast %cst_16 : f32 to vector<1x4xf32>
    %c80 = arith.constant 80 : index
    %c0_17 = arith.constant 0 : index
    %34 = vector.load %arg10[%c80, %c0_17] : memref<88x4xf32, #tpu.memory_space<vmem>>, vector<1x4xf32>
    tpu.vector_store %arg10[%c80, %c0_17], %33 {strides = array<i32>} : memref<88x4xf32, #tpu.memory_space<vmem>>, vector<1x4xf32>,
    %35 = tpu.iota {dimensions = array<i32: 0>} : vector<64x1xi32>
    %c16_i32 = arith.constant 16 : i32
    %c0_i32_18 = arith.constant 0 : i32
    %36 = arith.cmpi eq, %c16_i32, %c0_i32_18 : i32
    %c1_i32_19 = arith.constant 1 : i32
    %37 = arith.select %36, %c1_i32_19, %c16_i32 : i32
    %38 = vector.broadcast %37 : i32 to vector<64x1xi32>
    %39 = arith.remsi %35, %38 : vector<64x1xi32>
    %c0_i32_20 = arith.constant 0 : i32
    %40 = vector.broadcast %c0_i32_20 : i32 to vector<64x1xi32>
    %41 = arith.cmpi ne, %39, %40 : vector<64x1xi32>
    %c0_i32_21 = arith.constant 0 : i32
    %42 = vector.broadcast %c0_i32_21 : i32 to vector<64x1xi32>
    %43 = arith.cmpi slt, %39, %42 : vector<64x1xi32>
    %c0_i32_22 = arith.constant 0 : i32
    %44 = arith.cmpi slt, %37, %c0_i32_22 : i32
    %45 = vector.broadcast %44 : i1 to vector<64x1xi1>
    %46 = vector.broadcast %45 : vector<64x1xi1> to vector<64x1xi1>
    %47 = arith.xori %43, %46 : vector<64x1xi1>
    %48 = arith.andi %47, %41 : vector<64x1xi1>
    %49 = vector.broadcast %37 : i32 to vector<64x1xi32>
    %50 = arith.addi %39, %49 : vector<64x1xi32>
    %51 = arith.select %48, %50, %39 : vector<64x1xi1>, vector<64x1xi32>
    %c15_i32 = arith.constant 15 : i32
    %52 = vector.broadcast %c15_i32 : i32 to vector<64x1xi32>
    %53 = arith.cmpi ne, %51, %52 : vector<64x1xi32>
    %c0_23 = arith.constant 0 : index
    %c0_24 = arith.constant 0 : index
    %54 = vector.load %arg10[%c0_23, %c0_24] : memref<88x4xf32, #tpu.memory_space<vmem>>, vector<64x4xf32>
    %c0_25 = arith.constant 0 : index
    %c0_26 = arith.constant 0 : index
    %55 = vector.load %arg4[%c0_25, %c0_26] : memref<4x16xf32, #tpu.memory_space<vmem>>, vector<4x16xf32>
    %cst_27 = arith.constant dense<0.000000e+00> : vector<64x16xf32>
    %56 = tpu.matmul %54, %55, %cst_27 {dimension_numbers = #tpu.dot_dimension_numbers<[1], [0], [0], [1], [0, 0, 1, 1], [], []>, precision = #tpu.contract_precision<fp32>} : vector<64x4xf32>, vector<4x16xf32>, vector<64x16xf32> -> vector<64x16xf32>
    %c1_28 = arith.constant 1 : index
    %c0_29 = arith.constant 0 : index
    %57 = vector.load %arg10[%c1_28, %c0_29] : memref<88x4xf32, #tpu.memory_space<vmem>>, vector<64x4xf32>
    %c0_30 = arith.constant 0 : index
    %c0_31 = arith.constant 0 : index
    %58 = vector.load %arg5[%c0_30, %c0_31] : memref<4x16xf32, #tpu.memory_space<vmem>>, vector<4x16xf32>
    %cst_32 = arith.constant dense<0.000000e+00> : vector<64x16xf32>
    %59 = tpu.matmul %57, %58, %cst_32 {dimension_numbers = #tpu.dot_dimension_numbers<[1], [0], [0], [1], [0, 0, 1, 1], [], []>, precision = #tpu.contract_precision<fp32>} : vector<64x4xf32>, vector<4x16xf32>, vector<64x16xf32> -> vector<64x16xf32>
    %c16 = arith.constant 16 : index
    %c0_33 = arith.constant 0 : index
    %60 = vector.load %arg10[%c16, %c0_33] : memref<88x4xf32, #tpu.memory_space<vmem>>, vector<64x4xf32>
    %c0_34 = arith.constant 0 : index
    %c0_35 = arith.constant 0 : index
    %61 = vector.load %arg6[%c0_34, %c0_35] : memref<4x16xf32, #tpu.memory_space<vmem>>, vector<4x16xf32>
    %cst_36 = arith.constant dense<0.000000e+00> : vector<64x16xf32>
    %62 = tpu.matmul %60, %61, %cst_36 {dimension_numbers = #tpu.dot_dimension_numbers<[1], [0], [0], [1], [0, 0, 1, 1], [], []>, precision = #tpu.contract_precision<fp32>} : vector<64x4xf32>, vector<4x16xf32>, vector<64x16xf32> -> vector<64x16xf32>
    %c17 = arith.constant 17 : index
    %c0_37 = arith.constant 0 : index
    %63 = vector.load %arg10[%c17, %c0_37] : memref<88x4xf32, #tpu.memory_space<vmem>>, vector<64x4xf32>
    %c0_38 = arith.constant 0 : index
    %c0_39 = arith.constant 0 : index
    %64 = vector.load %arg7[%c0_38, %c0_39] : memref<4x16xf32, #tpu.memory_space<vmem>>, vector<4x16xf32>
    %cst_40 = arith.constant dense<0.000000e+00> : vector<64x16xf32>
    %65 = tpu.matmul %63, %64, %cst_40 {dimension_numbers = #tpu.dot_dimension_numbers<[1], [0], [0], [1], [0, 0, 1, 1], [], []>, precision = #tpu.contract_precision<fp32>} : vector<64x4xf32>, vector<4x16xf32>, vector<64x16xf32> -> vector<64x16xf32>
    %66 = arith.addf %56, %62 : vector<64x16xf32>
    %67 = arith.addf %59, %65 : vector<64x16xf32>
    %cst_41 = arith.constant 0.000000e+00 : f32
    %68 = vector.shape_cast %53 : vector<64x1xi1> to vector<64x1xi1>
    %69 = vector.broadcast %68 : vector<64x1xi1> to vector<64x16xi1>
    %70 = vector.broadcast %cst_41 : f32 to vector<64x16xf32>
    %71 = arith.select %69, %67, %70 : vector<64x16xi1>, vector<64x16xf32>
    %72 = arith.addf %66, %71 : vector<64x16xf32>
    %73 = vector.shape_cast %72 : vector<64x16xf32> to vector<4x16x16xf32>
    %c0_42 = arith.constant 0 : index
    %c0_43 = arith.constant 0 : index
    %c0_44 = arith.constant 0 : index
    %74 = vector.load %arg8[%c0_42, %c0_43, %c0_44] : memref<4x16x16xf32, #tpu.memory_space<vmem>>, vector<4x16x16xf32>
    tpu.vector_store %arg8[%c0_42, %c0_43, %c0_44], %73 {strides = array<i32>} : memref<4x16x16xf32, #tpu.memory_space<vmem>>, vector<4x16x16xf32>,
    %cst_45 = arith.constant dense<0.000000e+00> : vector<16xf32>
    %75 = vector.multi_reduction <add>, %72, %cst_45 [0] : vector<64x16xf32> to vector<16xf32>
    %76 = arith.mulf %72, %72 : vector<64x16xf32>
    %cst_46 = arith.constant dense<0.000000e+00> : vector<16xf32>
    %77 = vector.multi_reduction <add>, %76, %cst_46 [0] : vector<64x16xf32> to vector<16xf32>
    %78 = vector.shape_cast %75 : vector<16xf32> to vector<1x16xf32>
    %79 = vector.shape_cast %77 : vector<16xf32> to vector<1x16xf32>
    %80 = tpu.concatenate %78, %79 in 0 : vector<1x16xf32>, vector<1x16xf32> -> vector<2x16xf32>
    %81 = vector.shape_cast %80 : vector<2x16xf32> to vector<1x2x16xf32>
    %c0_47 = arith.constant 0 : index
    %c0_48 = arith.constant 0 : index
    %c0_49 = arith.constant 0 : index
    %82 = vector.load %arg9[%c0_47, %c0_48, %c0_49] : memref<1x2x16xf32, #tpu.memory_space<vmem>>, vector<1x2x16xf32>
    tpu.vector_store %arg9[%c0_47, %c0_48, %c0_49], %81 {strides = array<i32>} : memref<1x2x16xf32, #tpu.memory_space<vmem>>, vector<1x2x16xf32>,
    return
  }
  func.func @transform_0(%arg0: i32) -> (i32, i32, i32) {
    %c0_i32 = arith.constant 0 : i32
    %c0_i32_0 = arith.constant 0 : i32
    %c0_i32_1 = arith.constant 0 : i32
    return %arg0, %c0_i32, %c0_i32_0 : i32, i32, i32
  }
  func.func @transform_1(%arg0: i32) -> (i32, i32, i32) {
    %c1_i32 = arith.constant 1 : i32
    %0 = arith.addi %arg0, %c1_i32 : i32
    %c4_i32 = arith.constant 4 : i32
    %1 = arith.muli %0, %c4_i32 : i32
    %c31_i32 = arith.constant 31 : i32
    %2 = arith.minsi %1, %c31_i32 : i32
    %c0_i32 = arith.constant 0 : i32
    %c0_i32_0 = arith.constant 0 : i32
    %c0_i32_1 = arith.constant 0 : i32
    return %2, %c0_i32, %c0_i32_0 : i32, i32, i32
  }
  func.func @transform_2(%arg0: i32) -> (i32, i32) {
    %c0_i32 = arith.constant 0 : i32
    %c0_i32_0 = arith.constant 0 : i32
    %c0_i32_1 = arith.constant 0 : i32
    return %c0_i32, %c0_i32_0 : i32, i32
  }
  func.func @transform_3(%arg0: i32) -> (i32, i32) {
    %c0_i32 = arith.constant 0 : i32
    %c0_i32_0 = arith.constant 0 : i32
    %c0_i32_1 = arith.constant 0 : i32
    return %c0_i32, %c0_i32_0 : i32, i32
  }
  func.func @transform_4(%arg0: i32) -> (i32, i32) {
    %c0_i32 = arith.constant 0 : i32
    %c0_i32_0 = arith.constant 0 : i32
    %c0_i32_1 = arith.constant 0 : i32
    return %c0_i32, %c0_i32_0 : i32, i32
  }
  func.func @transform_5(%arg0: i32) -> (i32, i32) {
    %c0_i32 = arith.constant 0 : i32
    %c0_i32_0 = arith.constant 0 : i32
    %c0_i32_1 = arith.constant 0 : i32
    return %c0_i32, %c0_i32_0 : i32, i32
  }
  func.func @transform_6(%arg0: i32) -> (i32, i32) {
    %c0_i32 = arith.constant 0 : i32
    %c0_i32_0 = arith.constant 0 : i32
    %c0_i32_1 = arith.constant 0 : i32
    return %c0_i32, %c0_i32_0 : i32, i32
  }
  func.func @transform_7(%arg0: i32) -> (i32, i32, i32) {
    %c0_i32 = arith.constant 0 : i32
    %c0_i32_0 = arith.constant 0 : i32
    %c0_i32_1 = arith.constant 0 : i32
    return %arg0, %c0_i32, %c0_i32_0 : i32, i32, i32
  }
  func.func @transform_8(%arg0: i32) -> (i32, i32, i32) {
    %c0_i32 = arith.constant 0 : i32
    %c0_i32_0 = arith.constant 0 : i32
    %c0_i32_1 = arith.constant 0 : i32
    return %arg0, %c0_i32, %c0_i32_0 : i32, i32, i32
  }
}

module attributes {stable_mosaic.version = 11 : i64} {
  func.func @conv3_kernel(%arg0: i32, %arg1: memref<4x16x16xf32, #tpu.memory_space<vmem>>, %arg2: memref<2x16xf32, #tpu.memory_space<vmem>>, %arg3: memref<16x32xf32, #tpu.memory_space<vmem>>, %arg4: memref<4x16x32xf32, #tpu.memory_space<vmem>>, %arg5: memref<1x2x32xf32, #tpu.memory_space<vmem>>) attributes {dimension_semantics = [#tpu.dimension_semantics<parallel>], iteration_bounds = array<i64: 8>, scalar_prefetch = 0 : i64, scratch_operands = 0 : i64, tpu.core_type = #tpu.core_type<tc>, window_params = [{transform_indices = @transform_0, window_bounds = array<i64: 4, 16, 16>}, {pipeline_mode = #tpu.pipeline_mode<synchronous>, transform_indices = @transform_1, window_bounds = array<i64: 2, 16>}, {pipeline_mode = #tpu.pipeline_mode<synchronous>, transform_indices = @transform_2, window_bounds = array<i64: 16, 32>}, {transform_indices = @transform_3, window_bounds = array<i64: 4, 16, 32>}, {transform_indices = @transform_4, window_bounds = array<i64: 1, 2, 32>}]} {
    %c0 = arith.constant 0 : index
    %c0_0 = arith.constant 0 : index
    %0 = vector.load %arg2[%c0, %c0_0] : memref<2x16xf32, #tpu.memory_space<vmem>>, vector<1x16xf32>
    %c1 = arith.constant 1 : index
    %c0_1 = arith.constant 0 : index
    %1 = vector.load %arg2[%c1, %c0_1] : memref<2x16xf32, #tpu.memory_space<vmem>>, vector<1x16xf32>
    %c0_2 = arith.constant 0 : index
    %c0_3 = arith.constant 0 : index
    %c0_4 = arith.constant 0 : index
    %2 = vector.load %arg1[%c0_2, %c0_3, %c0_4] : memref<4x16x16xf32, #tpu.memory_space<vmem>>, vector<4x16x16xf32>
    %3 = vector.shape_cast %2 : vector<4x16x16xf32> to vector<64x16xf32>
    %4 = vector.broadcast %0 : vector<1x16xf32> to vector<64x16xf32>
    %5 = arith.mulf %3, %4 : vector<64x16xf32>
    %6 = vector.broadcast %1 : vector<1x16xf32> to vector<64x16xf32>
    %7 = arith.addf %5, %6 : vector<64x16xf32>
    %cst = arith.constant 0.000000e+00 : f32
    %8 = vector.broadcast %cst : f32 to vector<64x16xf32>
    %9 = arith.maximumf %7, %8 : vector<64x16xf32>
    %c0_5 = arith.constant 0 : index
    %c0_6 = arith.constant 0 : index
    %10 = vector.load %arg3[%c0_5, %c0_6] : memref<16x32xf32, #tpu.memory_space<vmem>>, vector<16x32xf32>
    %cst_7 = arith.constant dense<0.000000e+00> : vector<64x32xf32>
    %11 = tpu.matmul %9, %10, %cst_7 {dimension_numbers = #tpu.dot_dimension_numbers<[1], [0], [0], [1], [0, 0, 1, 1], [], []>, precision = #tpu.contract_precision<fp32>} : vector<64x16xf32>, vector<16x32xf32>, vector<64x32xf32> -> vector<64x32xf32>
    %12 = vector.shape_cast %11 : vector<64x32xf32> to vector<4x16x32xf32>
    %c0_8 = arith.constant 0 : index
    %c0_9 = arith.constant 0 : index
    %c0_10 = arith.constant 0 : index
    %13 = vector.load %arg4[%c0_8, %c0_9, %c0_10] : memref<4x16x32xf32, #tpu.memory_space<vmem>>, vector<4x16x32xf32>
    tpu.vector_store %arg4[%c0_8, %c0_9, %c0_10], %12 {strides = array<i32>} : memref<4x16x32xf32, #tpu.memory_space<vmem>>, vector<4x16x32xf32>,
    %cst_11 = arith.constant dense<0.000000e+00> : vector<32xf32>
    %14 = vector.multi_reduction <add>, %11, %cst_11 [0] : vector<64x32xf32> to vector<32xf32>
    %15 = arith.mulf %11, %11 : vector<64x32xf32>
    %cst_12 = arith.constant dense<0.000000e+00> : vector<32xf32>
    %16 = vector.multi_reduction <add>, %15, %cst_12 [0] : vector<64x32xf32> to vector<32xf32>
    %17 = vector.shape_cast %14 : vector<32xf32> to vector<1x32xf32>
    %18 = vector.shape_cast %16 : vector<32xf32> to vector<1x32xf32>
    %19 = tpu.concatenate %17, %18 in 0 : vector<1x32xf32>, vector<1x32xf32> -> vector<2x32xf32>
    %20 = vector.shape_cast %19 : vector<2x32xf32> to vector<1x2x32xf32>
    %c0_13 = arith.constant 0 : index
    %c0_14 = arith.constant 0 : index
    %c0_15 = arith.constant 0 : index
    %21 = vector.load %arg5[%c0_13, %c0_14, %c0_15] : memref<1x2x32xf32, #tpu.memory_space<vmem>>, vector<1x2x32xf32>
    tpu.vector_store %arg5[%c0_13, %c0_14, %c0_15], %20 {strides = array<i32>} : memref<1x2x32xf32, #tpu.memory_space<vmem>>, vector<1x2x32xf32>,
    return
  }
  func.func @transform_0(%arg0: i32) -> (i32, i32, i32) {
    %c0_i32 = arith.constant 0 : i32
    %c0_i32_0 = arith.constant 0 : i32
    %c0_i32_1 = arith.constant 0 : i32
    return %arg0, %c0_i32, %c0_i32_0 : i32, i32, i32
  }
  func.func @transform_1(%arg0: i32) -> (i32, i32) {
    %c0_i32 = arith.constant 0 : i32
    %c0_i32_0 = arith.constant 0 : i32
    %c0_i32_1 = arith.constant 0 : i32
    return %c0_i32, %c0_i32_0 : i32, i32
  }
  func.func @transform_2(%arg0: i32) -> (i32, i32) {
    %c0_i32 = arith.constant 0 : i32
    %c0_i32_0 = arith.constant 0 : i32
    %c0_i32_1 = arith.constant 0 : i32
    return %c0_i32, %c0_i32_0 : i32, i32
  }
  func.func @transform_3(%arg0: i32) -> (i32, i32, i32) {
    %c0_i32 = arith.constant 0 : i32
    %c0_i32_0 = arith.constant 0 : i32
    %c0_i32_1 = arith.constant 0 : i32
    return %arg0, %c0_i32, %c0_i32_0 : i32, i32, i32
  }
  func.func @transform_4(%arg0: i32) -> (i32, i32, i32) {
    %c0_i32 = arith.constant 0 : i32
    %c0_i32_0 = arith.constant 0 : i32
    %c0_i32_1 = arith.constant 0 : i32
    return %arg0, %c0_i32, %c0_i32_0 : i32, i32, i32
  }
}

</mosaic_0001>

<bundles_post_ra>
// kernel: tile.9
= control target key start
LH: loop header
LB: loop body
LE: loop exit
PB: predicated region body
PF: predicated region fallthrough
CT: control target
= control target key end

     0   :  { %s29_s10 = smov 3  ;;  %s10_s11 = smov 3  ;;  %vm12_vm0 = vcmask 31744   ;;  %vm19_vm1 = vcmask 130144   ;;  %vm26_vm2 = vcmask 97344   ;;  %vm33_vm3 = vcmask 64544   ;;  %s67_s0 = inlined_call_operand.vmem [shape: f32[2,4,4], index: 0, kind: input, shape index: {}]   ;;  %s68_s1 = inlined_call_operand.vmem [shape: f32[2,16], index: 1, kind: output, shape index: {}]  }
   0x1   :  { %v41_v0 = vld [vmem:[%s67_s0 + $0x4] sm:$0xf]  ;;  %v8_v1 = vld [vmem:[%s67_s0] sm:$0xf]  ;;  %s15_s0 = smov 3  ;;  %s22_s12 = smov 3 }
   0x2   :  { %7 = vst [vmem:[#allocation1 + $0x8] sm:$0xf] %v41_v0  ;;  %9 = vst [vmem:[#allocation1] sm:$0xf] %v8_v1  ;;  %s45_s13 = smov 12   ;;  %s46_s14 = smov 4  }
   0x3   :  { %s47_s15 = smov 8  }
   0x9   :  { %v16_v2 = vld [vmem:[#allocation1 + $0x3] ss:$8 sm:%s15_s0]   ;;  %v30_v3 = vld [vmem:[#allocation1 + $0x1] ss:$8 sm:%s29_s10]   ;;  %v11_v4 = vld [vmem:[#allocation1] ss:$8 sm:%s10_s11]  }
   0xa   :  { %17 = vrot.lane.b32.xlu0 %v16_v2, %s45_s13  ;;  %31 = vrot.lane.b32.xlu1 %v30_v3, %s46_s14  ;;  %v23_v5 = vld [vmem:[#allocation1 + $0x2] ss:$8 sm:%s22_s12]   ;;  %13 = vst.msk [vmem:[#allocation0] sm:$0x3] %vm12_vm0, %v11_v4  }
   0xe   :  { %24 = vrot.lane.b32.xlu0 %v23_v5, %s47_s15 }
  0x7c   :  { %v18_v6 = vpop.permute.xlu0 %17   ;;  %v32_v7 = vpop.permute.xlu1 %31  }
  0x7d   :  { %20 = vst.msk [vmem:[#allocation0] sm:$0x3] %vm19_vm1, %v18_v6  }
  0x80   :  { %v25_v8 = vpop.permute.xlu0 %24  }
  0x81   :  { %27 = vst.msk [vmem:[#allocation0] sm:$0x3] %vm26_vm2, %v25_v8  }
  0x82   :  { %34 = vst.msk [vmem:[#allocation0] sm:$0x3] %vm33_vm3, %v32_v7  }
  0x89   :  { %v38_v9 = vld [vmem:[#allocation0] sm:$0x3] }
  0x8a   :  { %40 = vst [vmem:[%s68_s1] sm:$0x3] %v38_v9 }

// kernel: decoder_block.3
= control target key start
LH: loop header
LB: loop body
LE: loop exit
PB: predicated region body
PF: predicated region fallthrough
CT: control target
= control target key end

     0   :  { %s1409_s12 = smov 0   ;;  %s1590_s0 = inlined_call_operand.vmem [shape: f32[32,16,16], index: 0, kind: input, shape index: {}]   ;;  %s1591_s1 = inlined_call_operand.vmem [shape: f32[16,4], index: 1, kind: input, shape index: {}]   ;;  %s1592_s2 = inlined_call_operand.vmem [shape: f32[32,16,4], index: 2, kind: output, shape index: {0}]   ;;  %s1593_s3 = inlined_call_operand.vmem [shape: f32[8,2,4], index: 3, kind: output, shape index: {1}]  }
   0x1 LB: > { %s1415_s13 = sadd.s32 4294967295, %s1387_s12   ;;  %p1141_p0 = scmp.ge.s32.totalorder %s1387_s12, 1  ;;  %s1387_s12 = sphi %s1409_s12, %s14_s12  }
   0x2   : > { %p142_p1 = scmp.lt.s32.totalorder %s1387_s12, 9 }
   0x4   : > { %p143_p2 = pnand %p1141_p0, %p142_p1 }
   0x5   : > { %v198_v0 = vld [vmem:[%s1591_s1] sm:$0xff] (!%p143_p2)  ;;  %v199_v1 = vld [vmem:[%s1591_s1 + $0x8] sm:$0xff] (!%p143_p2)  ;;  %s1142_s18 = sshll.u32 (!%p143_p2), %s1415_s13, 2  ;;  %vm200_vm0 = vcmask (!%p143_p2), 130048   ;;  %vm985_vm1 = vcmask (!%p143_p2), 31744   ;;  %p186_p4 = scmp.lt.s32.totalorder (!%p143_p2), %s1415_s13, 7 }
   0x6   : > { %146 = sbr.rel (%p143_p2) target bundleno = 309 (0x135), region = 28  ;;  %v226_v2 = vand.u32 (!%p143_p2), 4294901760, %v198_v0  ;;  %v229_v3 = vand.u32 (!%p143_p2), 4294901760, %v199_v1  ;;  %p173_p3 = scmp.lt.s32.totalorder (!%p143_p2), %s1142_s18, 31  ;;  %vm1044_vm2 = vcmask (!%p143_p2), 1040384   ;;  %vm1046_vm3 = vcmask (!%p143_p2), 25600  }
   0x8   : > { %v1426_v4 = vpack.c.bf16 (!%p143_p2), %v229_v3, %v226_v2  ;;  %v1430_v5 = vsub.f32 (!%p143_p2), %v198_v0, %v226_v2  ;;  %v1432_v6 = vsub.f32 (!%p143_p2), %v199_v1, %v229_v3 }
   0xa   : > { %1322 = vmatprep.subr.bf16.mxu0 (!%p143_p2), %v1426_v4  ;;  %1310 = vmatprep.subr.bf16.mxu1 (!%p143_p2), %v1426_v4  ;;  %v375_v7 = vand.u32 (!%p143_p2), 4294901760, %v1430_v5  ;;  %v382_v8 = vand.u32 (!%p143_p2), 4294901760, %v1432_v6  ;;  %v1317_v62 = vpack.c.bf16 (!%p143_p2), %v1432_v6, %v1430_v5 }
   0xb   : > { %1324 = vmatpush3.bf16.msra.mxu0 (!%p143_p2), %v1426_v4  ;;  %1312 = vmatpush3.bf16.msra.mxu1 (!%p143_p2), %v1426_v4 }
   0xc   : > { %v376_v11 = vsub.f32 (!%p143_p2), %v1430_v5, %v375_v7  ;;  %v383_v12 = vsub.f32 (!%p143_p2), %v1432_v6, %v382_v8  ;;  %v1325_v14 = vpack.c.bf16 (!%p143_p2), %v382_v8, %v375_v7 }
   0xd   : > { %s1595_s18 = smov (!%p173_p3, %s1142_s18), 31  ;;  %s1597_s13 = smov (!%p186_p4, %s1415_s13), 7 }
   0xe   : > { %s1151_s19 = sshll.u32 %s1595_s18, 4  ;;  %v377_v23 = vand.u32 4294901760, %v376_v11  ;;  %v384_v24 = vand.u32 4294901760, %v383_v12  ;;  %1326 = vmatprep.subr.bf16.mxu0 %v1325_v14  ;;  %s1148_s26 = sshll.u32 %s1597_s13, 1 }
   0xf   : > { %s177_s22 = scalar_lea.vmem %s1590_s0, %s1151_s19  ;;  %s1548_s25 = scalar_lea.vmem %s1592_s2, %s1151_s19 }
  0x10   : > { %v190_v9 = vld [vmem:[%s177_s22] sm:$0xff]  ;;  %v191_v10 = vld [vmem:[%s177_s22 + $0x8] sm:$0xff]  ;;  %v192_v13 = vld [vmem:[%s177_s22 + $0x10] sm:$0xff]  ;;  %v1313_v32 = vpack.c.bf16 %v384_v24, %v377_v23  ;;  %s189_s29 = scalar_lea.vmem %s1593_s3, %s1148_s26 }
  0x11   : > { %v202_v15 = vsel %vm200_vm0, %v190_v9, 0  ;;  %v205_v16 = vsel %vm200_vm0, %v191_v10, 0  ;;  %v208_v17 = vsel %vm200_vm0, %v192_v13, 0  ;;  %v193_v18 = vld [vmem:[%s177_s22 + $0x18] sm:$0xff]  ;;  %v194_v19 = vld [vmem:[%s177_s22 + $0x20] sm:$0xff]  ;;  %v195_v20 = vld [vmem:[%s177_s22 + $0x28] sm:$0xff] }
  0x12   : > { %v1451_v21 = vand.u32 4294901760, %v202_v15  ;;  %v1453_v22 = vand.u32 4294901760, %v205_v16  ;;  %v196_v25 = vld [vmem:[%s177_s22 + $0x30] sm:$0xff]  ;;  %v1455_v26 = vand.u32 4294901760, %v208_v17  ;;  %v211_v27 = vsel %vm200_vm0, %v193_v18, 0  ;;  %v197_v34 = vld [vmem:[%s177_s22 + $0x38] sm:$0xff]  ;;  %1314 = vmatprep.subr.bf16.mxu1 %v1313_v32 }
  0x13   : > { %v214_v28 = vsel %vm200_vm0, %v194_v19, 0  ;;  %v217_v29 = vsel %vm200_vm0, %v195_v20, 0  ;;  %v1466_v33 = vand.u32 4294901760, %v211_v27  ;;  %v220_v38 = vsel %vm200_vm0, %v196_v25, 0 }
  0x14   : > { %v1461_v30 = vsub.f32 %v202_v15, %v1451_v21  ;;  %v1464_v31 = vsub.f32 %v205_v16, %v1453_v22  ;;  %v1469_v35 = vsub.f32 %v208_v17, %v1455_v26  ;;  %v1471_v36 = vand.u32 4294901760, %v214_v28 }
  0x15   : > { %v1473_v37 = vand.u32 4294901760, %v217_v29  ;;  %v1479_v41 = vsub.f32 %v211_v27, %v1466_v33  ;;  %v1481_v42 = vand.u32 4294901760, %v220_v38  ;;  %v223_v46 = vsel %vm200_vm0, %v197_v34, 0 }
  0x16   : > { %v294_v39 = vand.u32 4294901760, %v1461_v30  ;;  %v304_v40 = vand.u32 4294901760, %v1464_v31  ;;  %v314_v43 = vand.u32 4294901760, %v1469_v35  ;;  %v1485_v44 = vsub.f32 %v214_v28, %v1471_v36 }
  0x17   : > { %v1488_v45 = vsub.f32 %v217_v29, %v1473_v37  ;;  %v324_v49 = vand.u32 4294901760, %v1479_v41  ;;  %v1495_v50 = vsub.f32 %v220_v38, %v1481_v42  ;;  %v1500_v54 = vand.u32 4294901760, %v223_v46 }
  0x18   : > { %1265 = vmatprep.mubr.f32.mxu0 %v294_v39  ;;  %v295_v47 = vsub.f32 %v1461_v30, %v294_v39  ;;  %v305_v48 = vsub.f32 %v1464_v31, %v304_v40  ;;  %v315_v51 = vsub.f32 %v1469_v35, %v314_v43  ;;  %v334_v52 = vand.u32 4294901760, %v1485_v44 }
  0x19   : > { %1266 = vmatmul.mubr.f32.vlgmr.msra.gmra.mrb[0].mxu0 %v304_v40  ;;  %v344_v53 = vand.u32 4294901760, %v1488_v45  ;;  %v325_v57 = vsub.f32 %v1479_v41, %v324_v49  ;;  %v354_v58 = vand.u32 4294901760, %v1495_v50  ;;  %v363_v61 = vsub.f32 %v223_v46, %v1500_v54 }
  0x1a   : > { %v296_v55 = vand.u32 4294901760, %v295_v47  ;;  %1268 = vmatprep.mubr.f32.mxu0 %v314_v43  ;;  %v306_v56 = vand.u32 4294901760, %v305_v48  ;;  %1328 = vmatpush3.bf16.msra.mxu0 %v1325_v14  ;;  %v316_v59 = vand.u32 4294901760, %v315_v51  ;;  %v335_v60 = vsub.f32 %v1485_v44, %v334_v52 }
  0x1b   : > { %1330 = vmatprep.subr.bf16.mxu0 %v1426_v4  ;;  %v326_v63 = vand.u32 4294901760, %v325_v57  ;;  %v345_v0 = vsub.f32 %v1488_v45, %v344_v53  ;;  %v364_v1 = vand.u32 4294901760, %v363_v61  ;;  %v355_v3 = vsub.f32 %v1495_v50, %v354_v58 }
  0x1c   : > { %1217 = vmatprep.mubr.f32.mxu1 %v296_v55  ;;  %v336_v2 = vand.u32 4294901760, %v335_v60 }
  0x1d   : > { %1218 = vmatmul.mubr.f32.vlgmr.msra.gmra.mrb[0].mxu1 %v306_v56  ;;  %1269 = vmatmul.mubr.f32.gmra.mrb[2].mxu0 %v324_v49  ;;  %v346_v7 = vand.u32 4294901760, %v345_v0  ;;  %v365_v5 = vsub.f32 %v363_v61, %v364_v1  ;;  %v356_v6 = vand.u32 4294901760, %v355_v3 }
  0x1e   : > { %1316 = vmatpush3.bf16.msra.mxu1 %v1313_v32  ;;  %1220 = vmatprep.mubr.f32.mxu1 %v316_v59 }
  0x1f   : > { %1271 = vmatprep.mubr.f32.mxu0 %v334_v52  ;;  %1318 = vmatprep.subr.bf16.mxu1 %v1317_v62  ;;  %v366_v8 = vand.u32 4294901760, %v365_v5 }
  0x21   : > { %1221 = vmatmul.mubr.f32.gmra.mrb[2].mxu1 %v326_v63  ;;  %1272 = vmatmul.mubr.f32.gmra.mrb[4].mxu0 %v344_v53 }
  0x22   : > { %1223 = vmatprep.mubr.f32.mxu1 %v336_v2  ;;  %1274 = vmatprep.mubr.f32.mxu0 %v354_v58 }
  0x25   : > { %1224 = vmatmul.mubr.f32.gmra.mrb[4].mxu1 %v346_v7  ;;  %1275 = vmatmul.mubr.f32.gmra.mrb[6].mxu0 %v364_v1 }
  0x26   : > { %1226 = vmatprep.mubr.f32.mxu1 %v356_v6  ;;  %1281 = vmatprep.mubr.f32.mxu0 %v1451_v21 }
  0x29   : > { %1227 = vmatmul.mubr.f32.gmra.mrb[6].mxu1 %v366_v8  ;;  %1282 = vmatmul.mubr.f32.vlgmr.msra.gmra.mrb[0].mxu0 %v1453_v22 }
  0x2a   : > { %1233 = vmatprep.mubr.f32.mxu1 %v1451_v21  ;;  %1284 = vmatprep.mubr.f32.mxu0 %v1455_v26 }
  0x2b   : > { %1332 = vmatpush3.bf16.msra.mxu0 %v1426_v4 }
  0x2d   : > { %1234 = vmatmul.mubr.f32.vlgmr.msra.gmra.mrb[0].mxu1 %v1453_v22  ;;  %1285 = vmatmul.mubr.f32.gmra.mrb[2].mxu0 %v1466_v33 }
  0x2e   : > { %1320 = vmatpush3.bf16.msra.mxu1 %v1317_v62  ;;  %1236 = vmatprep.mubr.f32.mxu1 %v1455_v26 }
  0x2f   : > { %1287 = vmatprep.mubr.f32.mxu0 %v1471_v36 }
  0x31   : > { %1237 = vmatmul.mubr.f32.gmra.mrb[2].mxu1 %v1466_v33  ;;  %1288 = vmatmul.mubr.f32.gmra.mrb[4].mxu0 %v1473_v37 }
  0x32   : > { %1239 = vmatprep.mubr.f32.mxu1 %v1471_v36  ;;  %1290 = vmatprep.mubr.f32.mxu0 %v1481_v42 }
  0x35   : > { %1240 = vmatmul.mubr.f32.gmra.mrb[4].mxu1 %v1473_v37  ;;  %1291 = vmatmul.mubr.f32.gmra.mrb[6].mxu0 %v1500_v54 }
  0x36   : > { %1242 = vmatprep.mubr.f32.mxu1 %v1481_v42  ;;  %1297 = vmatprep.mubr.f32.mxu0 %v1451_v21 }
  0x39   : > { %1243 = vmatmul.mubr.f32.gmra.mrb[6].mxu1 %v1500_v54  ;;  %1298 = vmatmul.mubr.f32.vlgmr.msra.gmra.mrb[0].mxu0 %v1453_v22 }
  0x3a   : > { %1249 = vmatprep.mubr.f32.mxu1 %v1461_v30  ;;  %1300 = vmatprep.mubr.f32.mxu0 %v1455_v26 }
  0x3d   : > { %1250 = vmatmul.mubr.f32.vlgmr.msra.gmra.mrb[0].mxu1 %v1464_v31  ;;  %1301 = vmatmul.mubr.f32.gmra.mrb[2].mxu0 %v1466_v33 }
  0x3e   : > { %1252 = vmatprep.mubr.f32.mxu1 %v1469_v35  ;;  %1303 = vmatprep.mubr.f32.mxu0 %v1471_v36 }
  0x41   : > { %1253 = vmatmul.mubr.f32.gmra.mrb[2].mxu1 %v1479_v41  ;;  %1304 = vmatmul.mubr.f32.gmra.mrb[4].mxu0 %v1473_v37 }
  0x42   : > { %1255 = vmatprep.mubr.f32.mxu1 %v1485_v44  ;;  %1306 = vmatprep.mubr.f32.mxu0 %v1481_v42 }
  0x45   : > { %1256 = vmatmul.mubr.f32.gmra.mrb[4].mxu1 %v1488_v45  ;;  %1307 = vmatmul.mubr.f32.gmra.mrb[6].mxu0 %v1500_v54 }
  0x46   : > { %1258 = vmatprep.mubr.f32.mxu1 %v1495_v50 }
  0x49   : > { %1259 = vmatmul.mubr.f32.gmra.mrb[6].mxu1 %v363_v61 }
 0x10c   : > { %v1299_v4 = vpop.f32.mrb[0].mxu0 }
 0x10d   : > { %v939_v9 = vpop.f32.mrb[1].mxu0 }
 0x110   : > { %v1251_v10 = vpop.f32.mrb[0].mxu1  ;;  %v1302_v11 = vpop.f32.mrb[2].mxu0 }
 0x111   : > { %v1333_v12 = vadd.f32 %v1299_v4, %v1251_v10  ;;  %v567_v13 = vpop.f32.mrb[1].mxu1  ;;  %v951_v14 = vpop.f32.mrb[3].mxu0 }
 0x112   : > { %v1334_v15 = vadd.f32 %v939_v9, %v567_v13 }
 0x113   : > { %987 = vst.msk [vmem:[%s1548_s25 + $0x8] sm:$0xff] %vm985_vm1, %v1333_v12  ;;  %v995_v16 = vsel %vm985_vm1, %v1333_v12, 0.0  ;;  %v1016_v17 = vmul.f32 %v1333_v12, %v1333_v12 }
 0x114   : > { %986 = vst.msk [vmem:[%s1548_s25] sm:$0xff] %vm985_vm1, %v1334_v15  ;;  %v994_v18 = vsel %vm985_vm1, %v1334_v15, 0.0  ;;  %v1015_v19 = vmul.f32 %v1334_v15, %v1334_v15  ;;  %v1254_v20 = vpop.f32.mrb[2].mxu1  ;;  %v1305_v21 = vpop.f32.mrb[4].mxu0 }
 0x115   : > { %v1024_v22 = vsel %vm985_vm1, %v1016_v17, 0.0  ;;  %v996_v23 = vadd.f32 %v995_v16, %v994_v18  ;;  %v1335_v24 = vadd.f32 %v1302_v11, %v1254_v20  ;;  %v581_v25 = vpop.f32.mrb[3].mxu1  ;;  %v963_v26 = vpop.f32.mrb[5].mxu0 }
 0x116   : > { %v1023_v27 = vsel %vm985_vm1, %v1015_v19, 0.0  ;;  %v1336_v28 = vadd.f32 %v951_v14, %v581_v25 }
 0x117   : > { %v1025_v29 = vadd.f32 %v1024_v22, %v1023_v27  ;;  %989 = vst.msk [vmem:[%s1548_s25 + $0x18] sm:$0xff] %vm985_vm1, %v1335_v24  ;;  %v1018_v30 = vmul.f32 %v1335_v24, %v1335_v24  ;;  %v999_v39 = vsel %vm985_vm1, %v1335_v24, 0.0 }
 0x118   : > { %988 = vst.msk [vmem:[%s1548_s25 + $0x10] sm:$0xff] %vm985_vm1, %v1336_v28  ;;  %v997_v31 = vsel %vm985_vm1, %v1336_v28, 0.0  ;;  %v1017_v32 = vmul.f32 %v1336_v28, %v1336_v28  ;;  %v1257_v33 = vpop.f32.mrb[4].mxu1  ;;  %v1308_v34 = vpop.f32.mrb[6].mxu0 }
 0x119   : > { %v998_v35 = vadd.f32 %v997_v31, %v996_v23  ;;  %v1337_v36 = vadd.f32 %v1305_v21, %v1257_v33  ;;  %v595_v37 = vpop.f32.mrb[5].mxu1  ;;  %v975_v38 = vpop.f32.mrb[7].mxu0  ;;  %v1028_v44 = vsel %vm985_vm1, %v1018_v30, 0.0 }
 0x11a   : > { %v1026_v40 = vsel %vm985_vm1, %v1017_v32, 0.0  ;;  %v1338_v41 = vadd.f32 %v963_v26, %v595_v37 }
 0x11b   : > { %v1027_v42 = vadd.f32 %v1026_v40, %v1025_v29  ;;  %991 = vst.msk [vmem:[%s1548_s25 + $0x28] sm:$0xff] %vm985_vm1, %v1337_v36  ;;  %v1000_v43 = vadd.f32 %v999_v39, %v998_v35  ;;  %v1020_v45 = vmul.f32 %v1337_v36, %v1337_v36  ;;  %v1003_v53 = vsel %vm985_vm1, %v1337_v36, 0.0 }
 0x11c   : > { %990 = vst.msk [vmem:[%s1548_s25 + $0x20] sm:$0xff] %vm985_vm1, %v1338_v41  ;;  %v1001_v46 = vsel %vm985_vm1, %v1338_v41, 0.0  ;;  %v1019_v47 = vmul.f32 %v1338_v41, %v1338_v41  ;;  %v1260_v48 = vpop.f32.mrb[6].mxu1 }
 0x11d   : > { %v1002_v49 = vadd.f32 %v1001_v46, %v1000_v43  ;;  %v1029_v50 = vadd.f32 %v1028_v44, %v1027_v42  ;;  %v1339_v51 = vadd.f32 %v1308_v34, %v1260_v48  ;;  %v609_v52 = vpop.f32.mrb[7].mxu1  ;;  %v1032_v58 = vsel %vm985_vm1, %v1020_v45, 0.0 }
 0x11e   : > { %v1030_v54 = vsel %vm985_vm1, %v1019_v47, 0.0  ;;  %v1340_v55 = vadd.f32 %v975_v38, %v609_v52 }
 0x11f   : > { %v1031_v56 = vadd.f32 %v1030_v54, %v1029_v50  ;;  %993 = vst.msk [vmem:[%s1548_s25 + $0x38] sm:$0xff] %vm985_vm1, %v1339_v51  ;;  %v1004_v57 = vadd.f32 %v1003_v53, %v1002_v49  ;;  %v1022_v59 = vmul.f32 %v1339_v51, %v1339_v51  ;;  %v1007_v0 = vsel %vm985_vm1, %v1339_v51, 0.0 }
 0x120   : > { %992 = vst.msk [vmem:[%s1548_s25 + $0x30] sm:$0xff] %vm985_vm1, %v1340_v55  ;;  %v1005_v60 = vsel %vm985_vm1, %v1340_v55, 0.0  ;;  %v1021_v61 = vmul.f32 %v1340_v55, %v1340_v55 }
 0x121   : > { %v1006_v62 = vadd.f32 %v1005_v60, %v1004_v57  ;;  %v1033_v63 = vadd.f32 %v1032_v58, %v1031_v56  ;;  %v1036_v7 = vsel %vm985_vm1, %v1022_v59, 0.0 }
 0x122   : > { %v1034_v1 = vsel %vm985_vm1, %v1021_v61, 0.0 }
 0x123   : > { %v1008_v2 = vadd.f32 %v1007_v0, %v1006_v62  ;;  %v1035_v3 = vadd.f32 %v1034_v1, %v1033_v63 }
 0x125   : > { %v1009_v5 = vrot.slane %v1008_v2, 4  ;;  %v1037_v6 = vadd.f32 %v1036_v7, %v1035_v3 }
 0x127   : > { %v1010_v8 = vadd.f32 %v1009_v5, %v1008_v2  ;;  %v1038_v4 = vrot.slane %v1037_v6, 4 }
 0x129   : > { %v1011_v9 = vrot.slane %v1010_v8, 2  ;;  %v1039_v10 = vadd.f32 %v1038_v4, %v1037_v6 }
 0x12b   : > { %v1012_v11 = vadd.f32 %v1011_v9, %v1010_v8  ;;  %v1040_v12 = vrot.slane %v1039_v10, 2 }
 0x12d   : > { %v1013_v13 = vrot.slane %v1012_v11, 1  ;;  %v1041_v14 = vadd.f32 %v1040_v12, %v1039_v10 }
 0x12f   : > { %v1042_v15 = vrot.slane %v1041_v14, 1  ;;  %v1014_v16 = vadd.f32 %v1013_v13, %v1012_v11 }
 0x131   : > { %v1043_v17 = vadd.f32 %v1042_v15, %v1041_v14 }
 0x133   : > { %v1045_v18 = vsel %vm1044_vm2, %v1014_v16, %v1043_v17 }
 0x134   : > { %1047 = vst.msk [vmem:[%s189_s29] sm:$0x3] %vm1046_vm3, %v1045_v18 }
 0x135 PF: > { %s14_s12 = sadd.s32 1, %s1387_s12  }
 0x136   : > { %p11_p5 = scmp.ge.s32.totalorder %s14_s12, 10  }
 0x138   :  { %13 = sbr.rel (!%p11_p5) target bundleno = 1 (0x1), region = 70 }

// kernel: decoder_block.5
= control target key start
LH: loop header
LB: loop body
LE: loop exit
PB: predicated region body
PF: predicated region fallthrough
CT: control target
= control target key end

     0   :  { %s1477_s15 = smov 0   ;;  %s1666_s0 = inlined_call_operand.vmem [shape: f32[32,16,16], index: 0, kind: input, shape index: {}]   ;;  %s1667_s1 = inlined_call_operand.vmem [shape: f32[2,16], index: 1, kind: input, shape index: {}]   ;;  %s1668_s2 = inlined_call_operand.vmem [shape: f32[16,32], index: 2, kind: input, shape index: {}]   ;;  %s1669_s3 = inlined_call_operand.vmem [shape: f32[32,16,32], index: 3, kind: output, shape index: {0}]   ;;  %s1670_s4 = inlined_call_operand.vmem [shape: f32[8,2,32], index: 4, kind: output, shape index: {1}]  }
   0x1 LB: > { %s1483_s16 = sadd.s32 4294967295, %s1450_s15   ;;  %p1202_p0 = scmp.ge.s32.totalorder %s1450_s15, 1  ;;  %s1450_s15 = sphi %s1477_s15, %s15_s15  }
   0x2   : > { %p167_p1 = scmp.lt.s32.totalorder %s1450_s15, 9 }
   0x4   : > { %p168_p2 = pnand %p1202_p0, %p167_p1 }
   0x5   : > { %v259_v0 = vld [vmem:[%s1668_s2] sm:$0xff] (!%p168_p2)  ;;  %v260_v1 = vld [vmem:[%s1668_s2 + $0x8] sm:$0xff] (!%p168_p2)  ;;  %s1203_s21 = sshll.u32 (!%p168_p2), %s1483_s16, 2  ;;  %vm261_vm0 = vcmask (!%p168_p2), 130048   ;;  %vm1046_vm1 = vcmask (!%p168_p2), 261120   ;;  %p213_p4 = scmp.lt.s32.totalorder (!%p168_p2), %s1483_s16, 7 }
   0x6   : > { %171 = sbr.rel (%p168_p2) target bundleno = 315 (0x13b), region = 32  ;;  %v287_v2 = vand.u32 (!%p168_p2), 4294901760, %v259_v0  ;;  %v290_v3 = vand.u32 (!%p168_p2), 4294901760, %v260_v1  ;;  %p200_p3 = scmp.lt.s32.totalorder (!%p168_p2), %s1203_s21, 31  ;;  %v1210_v7 = vld [vmem:[%s1667_s1] ss:$0 sm:$0xff] (!%p168_p2) }
   0x7   : > { %v1211_v10 = vld [vmem:[%s1667_s1 + $0x1] ss:$0 sm:$0xff] (!%p168_p2)  ;;  %vm1105_vm2 = vcmask (!%p168_p2), 1040384   ;;  %vm1107_vm3 = vcmask (!%p168_p2), 254976  }
   0x8   : > { %v1494_v4 = vpack.c.bf16 (!%p168_p2), %v290_v3, %v287_v2  ;;  %v1498_v5 = vsub.f32 (!%p168_p2), %v259_v0, %v287_v2  ;;  %v1500_v6 = vsub.f32 (!%p168_p2), %v260_v1, %v290_v3 }
   0xa   : > { %1385 = vmatprep.subr.bf16.mxu0 (!%p168_p2), %v1494_v4  ;;  %1373 = vmatprep.subr.bf16.mxu1 (!%p168_p2), %v1494_v4  ;;  %v436_v8 = vand.u32 (!%p168_p2), 4294901760, %v1498_v5  ;;  %v443_v9 = vand.u32 (!%p168_p2), 4294901760, %v1500_v6 }
   0xb   : > { %1387 = vmatpush3.bf16.msra.mxu0 (!%p168_p2), %v1494_v4  ;;  %1375 = vmatpush3.bf16.msra.mxu1 (!%p168_p2), %v1494_v4 }
   0xc   : > { %v437_v13 = vsub.f32 (!%p168_p2), %v1498_v5, %v436_v8  ;;  %v444_v14 = vsub.f32 (!%p168_p2), %v1500_v6, %v443_v9  ;;  %v1522_v16 = vpack.c.bf16 (!%p168_p2), %v443_v9, %v436_v8 }
   0xd   : > { %s1672_s21 = smov (!%p200_p3, %s1203_s21), 31  ;;  %s1674_s16 = smov (!%p213_p4, %s1483_s16), 7 }
   0xe   : > { %s1214_s22 = sshll.u32 %s1672_s21, 4  ;;  %v438_v23 = vand.u32 4294901760, %v437_v13  ;;  %v445_v24 = vand.u32 4294901760, %v444_v14  ;;  %1389 = vmatprep.subr.bf16.mxu0 %v1522_v16  ;;  %s1209_s7 = sshll.u32 %s1674_s16, 1 }
   0xf   : > { %s204_s27 = scalar_lea.vmem %s1666_s0, %s1214_s22  ;;  %s1624_s6 = scalar_lea.vmem %s1669_s3, %s1214_s22 }
  0x10   : > { %v219_v11 = vld [vmem:[%s204_s27] sm:$0xff]  ;;  %v220_v12 = vld [vmem:[%s204_s27 + $0x8] sm:$0xff]  ;;  %v221_v15 = vld [vmem:[%s204_s27 + $0x10] sm:$0xff]  ;;  %v1525_v33 = vpack.c.bf16 %v445_v24, %v438_v23  ;;  %s216_s10 = scalar_lea.vmem %s1670_s4, %s1209_s7 }
  0x11   : > { %v231_v17 = vmul.f32 %v1210_v7, %v219_v11  ;;  %v232_v18 = vmul.f32 %v1210_v7, %v220_v12  ;;  %v233_v19 = vmul.f32 %v1210_v7, %v221_v15  ;;  %v222_v20 = vld [vmem:[%s204_s27 + $0x18] sm:$0xff]  ;;  %v223_v21 = vld [vmem:[%s204_s27 + $0x20] sm:$0xff]  ;;  %v224_v22 = vld [vmem:[%s204_s27 + $0x28] sm:$0xff] }
  0x12   : > { %v234_v25 = vmul.f32 %v1210_v7, %v222_v20  ;;  %v235_v26 = vmul.f32 %v1210_v7, %v223_v21  ;;  %v225_v27 = vld [vmem:[%s204_s27 + $0x30] sm:$0xff]  ;;  %v236_v31 = vmul.f32 %v1210_v7, %v224_v22  ;;  %v226_v32 = vld [vmem:[%s204_s27 + $0x38] sm:$0xff]  ;;  %1377 = vmatprep.subr.bf16.mxu1 %v1525_v33 }
  0x13   : > { %v243_v28 = vadd.f32 %v1211_v10, %v231_v17  ;;  %v244_v29 = vadd.f32 %v1211_v10, %v232_v18  ;;  %v245_v30 = vadd.f32 %v1211_v10, %v233_v19  ;;  %v237_v36 = vmul.f32 %v1210_v7, %v225_v27 }
  0x14   : > { %v246_v34 = vadd.f32 %v1211_v10, %v234_v25  ;;  %v247_v35 = vadd.f32 %v1211_v10, %v235_v26  ;;  %v248_v40 = vadd.f32 %v1211_v10, %v236_v31  ;;  %v238_v44 = vmul.f32 %v1210_v7, %v226_v32 }
  0x15   : > { %v251_v37 = vmax.f32 %v243_v28, 0.0  ;;  %v252_v38 = vmax.f32 %v244_v29, 0.0  ;;  %v253_v39 = vmax.f32 %v245_v30, 0.0  ;;  %v249_v43 = vadd.f32 %v1211_v10, %v237_v36 }
  0x16   : > { %v254_v41 = vmax.f32 %v246_v34, 0.0  ;;  %v255_v42 = vmax.f32 %v247_v35, 0.0  ;;  %v256_v48 = vmax.f32 %v248_v40, 0.0  ;;  %v250_v0 = vadd.f32 %v1211_v10, %v238_v44 }
  0x17   : > { %v263_v45 = vsel %vm261_vm0, %v251_v37, 0  ;;  %v266_v46 = vsel %vm261_vm0, %v252_v38, 0  ;;  %v269_v47 = vsel %vm261_vm0, %v253_v39, 0  ;;  %v257_v56 = vmax.f32 %v249_v43, 0.0 }
  0x18   : > { %v1531_v49 = vand.u32 4294901760, %v263_v45  ;;  %v1533_v50 = vand.u32 4294901760, %v266_v46  ;;  %v1535_v51 = vand.u32 4294901760, %v269_v47  ;;  %v272_v52 = vsel %vm261_vm0, %v254_v41, 0 }
  0x19   : > { %v1538_v53 = vand.u32 4294901760, %v272_v52  ;;  %v275_v54 = vsel %vm261_vm0, %v255_v42, 0  ;;  %v278_v55 = vsel %vm261_vm0, %v256_v48, 0  ;;  %v281_v63 = vsel %vm261_vm0, %v257_v56, 0 }
  0x1a   : > { %v1543_v57 = vsub.f32 %v263_v45, %v1531_v49  ;;  %v1546_v58 = vsub.f32 %v266_v46, %v1533_v50  ;;  %v1549_v59 = vsub.f32 %v269_v47, %v1535_v51  ;;  %v1551_v60 = vand.u32 4294901760, %v275_v54 }
  0x1b   : > { %v1554_v61 = vsub.f32 %v272_v52, %v1538_v53  ;;  %v1556_v62 = vand.u32 4294901760, %v278_v55  ;;  %v1569_v11 = vand.u32 4294901760, %v281_v63  ;;  %v258_v12 = vmax.f32 %v250_v0, 0.0 }
  0x1c   : > { %v355_v1 = vand.u32 4294901760, %v1543_v57  ;;  %v365_v2 = vand.u32 4294901760, %v1546_v58  ;;  %v375_v3 = vand.u32 4294901760, %v1549_v59  ;;  %v1563_v7 = vsub.f32 %v275_v54, %v1551_v60 }
  0x1d   : > { %v385_v8 = vand.u32 4294901760, %v1554_v61  ;;  %v1567_v9 = vsub.f32 %v278_v55, %v1556_v62  ;;  %v1578_v19 = vsub.f32 %v281_v63, %v1569_v11  ;;  %v284_v20 = vsel %vm261_vm0, %v258_v12, 0 }
  0x1e   : > { %1328 = vmatprep.mubr.f32.mxu0 %v355_v1  ;;  %v356_v10 = vsub.f32 %v1543_v57, %v355_v1  ;;  %v366_v13 = vsub.f32 %v1546_v58, %v365_v2  ;;  %v376_v14 = vsub.f32 %v1549_v59, %v375_v3  ;;  %v395_v15 = vand.u32 4294901760, %v1563_v7 }
  0x1f   : > { %1329 = vmatmul.mubr.f32.vlgmr.msra.gmra.mrb[0].mxu0 %v365_v2  ;;  %v386_v17 = vsub.f32 %v1554_v61, %v385_v8  ;;  %v405_v18 = vand.u32 4294901760, %v1567_v9  ;;  %v415_v25 = vand.u32 4294901760, %v1578_v19  ;;  %v423_v26 = vand.u32 4294901760, %v284_v20 }
  0x20   : > { %v357_v21 = vand.u32 4294901760, %v356_v10  ;;  %1331 = vmatprep.mubr.f32.mxu0 %v375_v3  ;;  %v367_v22 = vand.u32 4294901760, %v366_v13  ;;  %1391 = vmatpush3.bf16.msra.mxu0 %v1522_v16  ;;  %v377_v23 = vand.u32 4294901760, %v376_v14  ;;  %v396_v24 = vsub.f32 %v1563_v7, %v395_v15 }
  0x21   : > { %v1380_v27 = vpack.c.bf16 %v1500_v6, %v1498_v5  ;;  %1393 = vmatprep.subr.bf16.mxu0 %v1494_v4  ;;  %v387_v28 = vand.u32 4294901760, %v386_v17  ;;  %v406_v29 = vsub.f32 %v1567_v9, %v405_v18  ;;  %v424_v30 = vsub.f32 %v284_v20, %v423_v26 }
  0x22   : > { %1280 = vmatprep.mubr.f32.mxu1 %v357_v21  ;;  %v397_v16 = vand.u32 4294901760, %v396_v24  ;;  %v416_v31 = vsub.f32 %v1578_v19, %v415_v25 }
  0x23   : > { %1281 = vmatmul.mubr.f32.vlgmr.msra.gmra.mrb[0].mxu1 %v367_v22  ;;  %1332 = vmatmul.mubr.f32.gmra.mrb[2].mxu0 %v385_v8  ;;  %v425_v32 = vand.u32 4294901760, %v424_v30  ;;  %v407_v5 = vand.u32 4294901760, %v406_v29 }
  0x24   : > { %1379 = vmatpush3.bf16.msra.mxu1 %v1525_v33  ;;  %1283 = vmatprep.mubr.f32.mxu1 %v377_v23  ;;  %v417_v34 = vand.u32 4294901760, %v416_v31 }
  0x25   : > { %1334 = vmatprep.mubr.f32.mxu0 %v395_v15  ;;  %1381 = vmatprep.subr.bf16.mxu1 %v1380_v27  ;;  %v426_v6 = vsub.f32 %v424_v30, %v425_v32 }
  0x27   : > { %1284 = vmatmul.mubr.f32.gmra.mrb[2].mxu1 %v387_v28  ;;  %1335 = vmatmul.mubr.f32.gmra.mrb[4].mxu0 %v405_v18  ;;  %v427_v35 = vand.u32 4294901760, %v426_v6 }
  0x28   : > { %1286 = vmatprep.mubr.f32.mxu1 %v397_v16  ;;  %1337 = vmatprep.mubr.f32.mxu0 %v415_v25 }
  0x2b   : > { %1287 = vmatmul.mubr.f32.gmra.mrb[4].mxu1 %v407_v5  ;;  %1338 = vmatmul.mubr.f32.gmra.mrb[6].mxu0 %v425_v32 }
  0x2c   : > { %1289 = vmatprep.mubr.f32.mxu1 %v417_v34  ;;  %1344 = vmatprep.mubr.f32.mxu0 %v1531_v49 }
  0x2f   : > { %1290 = vmatmul.mubr.f32.gmra.mrb[6].mxu1 %v427_v35  ;;  %1345 = vmatmul.mubr.f32.vlgmr.msra.gmra.mrb[0].mxu0 %v1533_v50 }
  0x30   : > { %1296 = vmatprep.mubr.f32.mxu1 %v1531_v49  ;;  %1347 = vmatprep.mubr.f32.mxu0 %v1535_v51 }
  0x31   : > { %1395 = vmatpush3.bf16.msra.mxu0 %v1494_v4 }
  0x33   : > { %1297 = vmatmul.mubr.f32.vlgmr.msra.gmra.mrb[0].mxu1 %v1533_v50  ;;  %1348 = vmatmul.mubr.f32.gmra.mrb[2].mxu0 %v1538_v53 }
  0x34   : > { %1383 = vmatpush3.bf16.msra.mxu1 %v1380_v27  ;;  %1299 = vmatprep.mubr.f32.mxu1 %v1535_v51 }
  0x35   : > { %1350 = vmatprep.mubr.f32.mxu0 %v1551_v60 }
  0x37   : > { %1300 = vmatmul.mubr.f32.gmra.mrb[2].mxu1 %v1538_v53  ;;  %1351 = vmatmul.mubr.f32.gmra.mrb[4].mxu0 %v1556_v62 }
  0x38   : > { %1302 = vmatprep.mubr.f32.mxu1 %v1551_v60  ;;  %1353 = vmatprep.mubr.f32.mxu0 %v1569_v11 }
  0x3b   : > { %1303 = vmatmul.mubr.f32.gmra.mrb[4].mxu1 %v1556_v62  ;;  %1354 = vmatmul.mubr.f32.gmra.mrb[6].mxu0 %v423_v26 }
  0x3c   : > { %1305 = vmatprep.mubr.f32.mxu1 %v1569_v11  ;;  %1360 = vmatprep.mubr.f32.mxu0 %v1531_v49 }
  0x3f   : > { %1306 = vmatmul.mubr.f32.gmra.mrb[6].mxu1 %v423_v26  ;;  %1361 = vmatmul.mubr.f32.vlgmr.msra.gmra.mrb[0].mxu0 %v1533_v50 }
  0x40   : > { %1312 = vmatprep.mubr.f32.mxu1 %v1543_v57  ;;  %1363 = vmatprep.mubr.f32.mxu0 %v1535_v51 }
  0x43   : > { %1313 = vmatmul.mubr.f32.vlgmr.msra.gmra.mrb[0].mxu1 %v1546_v58  ;;  %1364 = vmatmul.mubr.f32.gmra.mrb[2].mxu0 %v1538_v53 }
  0x44   : > { %1315 = vmatprep.mubr.f32.mxu1 %v1549_v59  ;;  %1366 = vmatprep.mubr.f32.mxu0 %v1551_v60 }
  0x47   : > { %1316 = vmatmul.mubr.f32.gmra.mrb[2].mxu1 %v1554_v61  ;;  %1367 = vmatmul.mubr.f32.gmra.mrb[4].mxu0 %v1556_v62 }
  0x48   : > { %1318 = vmatprep.mubr.f32.mxu1 %v1563_v7  ;;  %1369 = vmatprep.mubr.f32.mxu0 %v1569_v11 }
  0x4b   : > { %1319 = vmatmul.mubr.f32.gmra.mrb[4].mxu1 %v1567_v9  ;;  %1370 = vmatmul.mubr.f32.gmra.mrb[6].mxu0 %v423_v26 }
  0x4c   : > { %1321 = vmatprep.mubr.f32.mxu1 %v1578_v19 }
  0x4f   : > { %1322 = vmatmul.mubr.f32.gmra.mrb[6].mxu1 %v424_v30 }
 0x112   : > { %v1362_v4 = vpop.f32.mrb[0].mxu0 }
 0x113   : > { %v1000_v33 = vpop.f32.mrb[1].mxu0 }
 0x116   : > { %v1314_v36 = vpop.f32.mrb[0].mxu1  ;;  %v1365_v37 = vpop.f32.mrb[2].mxu0 }
 0x117   : > { %v1396_v38 = vadd.f32 %v1362_v4, %v1314_v36  ;;  %v628_v39 = vpop.f32.mrb[1].mxu1  ;;  %v1012_v40 = vpop.f32.mrb[3].mxu0 }
 0x118   : > { %v1397_v41 = vadd.f32 %v1000_v33, %v628_v39 }
 0x119   : > { %1048 = vst.msk [vmem:[%s1624_s6 + $0x8] sm:$0xff] %vm1046_vm1, %v1396_v38  ;;  %v1056_v42 = vsel %vm1046_vm1, %v1396_v38, 0.0  ;;  %v1077_v43 = vmul.f32 %v1396_v38, %v1396_v38 }
 0x11a   : > { %1047 = vst.msk [vmem:[%s1624_s6] sm:$0xff] %vm1046_vm1, %v1397_v41  ;;  %v1055_v44 = vsel %vm1046_vm1, %v1397_v41, 0.0  ;;  %v1076_v45 = vmul.f32 %v1397_v41, %v1397_v41  ;;  %v1317_v46 = vpop.f32.mrb[2].mxu1  ;;  %v1368_v47 = vpop.f32.mrb[4].mxu0 }
 0x11b   : > { %v1085_v48 = vsel %vm1046_vm1, %v1077_v43, 0.0  ;;  %v1057_v49 = vadd.f32 %v1056_v42, %v1055_v44  ;;  %v1398_v50 = vadd.f32 %v1365_v37, %v1317_v46  ;;  %v642_v51 = vpop.f32.mrb[3].mxu1  ;;  %v1024_v52 = vpop.f32.mrb[5].mxu0 }
 0x11c   : > { %v1084_v53 = vsel %vm1046_vm1, %v1076_v45, 0.0  ;;  %v1399_v54 = vadd.f32 %v1012_v40, %v642_v51 }
 0x11d   : > { %v1086_v55 = vadd.f32 %v1085_v48, %v1084_v53  ;;  %1050 = vst.msk [vmem:[%s1624_s6 + $0x18] sm:$0xff] %vm1046_vm1, %v1398_v50  ;;  %v1079_v56 = vmul.f32 %v1398_v50, %v1398_v50  ;;  %v1060_v1 = vsel %vm1046_vm1, %v1398_v50, 0.0 }
 0x11e   : > { %1049 = vst.msk [vmem:[%s1624_s6 + $0x10] sm:$0xff] %vm1046_vm1, %v1399_v54  ;;  %v1058_v57 = vsel %vm1046_vm1, %v1399_v54, 0.0  ;;  %v1078_v58 = vmul.f32 %v1399_v54, %v1399_v54  ;;  %v1320_v59 = vpop.f32.mrb[4].mxu1  ;;  %v1371_v60 = vpop.f32.mrb[6].mxu0 }
 0x11f   : > { %v1059_v61 = vadd.f32 %v1058_v57, %v1057_v49  ;;  %v1400_v62 = vadd.f32 %v1368_v47, %v1320_v59  ;;  %v656_v63 = vpop.f32.mrb[5].mxu1  ;;  %v1036_v0 = vpop.f32.mrb[7].mxu0  ;;  %v1089_v9 = vsel %vm1046_vm1, %v1079_v56, 0.0 }
 0x120   : > { %v1087_v2 = vsel %vm1046_vm1, %v1078_v58, 0.0  ;;  %v1401_v3 = vadd.f32 %v1024_v52, %v656_v63 }
 0x121   : > { %v1088_v7 = vadd.f32 %v1087_v2, %v1086_v55  ;;  %1052 = vst.msk [vmem:[%s1624_s6 + $0x28] sm:$0xff] %vm1046_vm1, %v1400_v62  ;;  %v1061_v8 = vadd.f32 %v1060_v1, %v1059_v61  ;;  %v1081_v11 = vmul.f32 %v1400_v62, %v1400_v62  ;;  %v1064_v19 = vsel %vm1046_vm1, %v1400_v62, 0.0 }
 0x122   : > { %1051 = vst.msk [vmem:[%s1624_s6 + $0x20] sm:$0xff] %vm1046_vm1, %v1401_v3  ;;  %v1062_v12 = vsel %vm1046_vm1, %v1401_v3, 0.0  ;;  %v1080_v10 = vmul.f32 %v1401_v3, %v1401_v3  ;;  %v1323_v13 = vpop.f32.mrb[6].mxu1 }
 0x123   : > { %v1063_v14 = vadd.f32 %v1062_v12, %v1061_v8  ;;  %v1090_v15 = vadd.f32 %v1089_v9, %v1088_v7  ;;  %v1402_v17 = vadd.f32 %v1371_v60, %v1323_v13  ;;  %v670_v18 = vpop.f32.mrb[7].mxu1  ;;  %v1093_v24 = vsel %vm1046_vm1, %v1081_v11, 0.0 }
 0x124   : > { %v1091_v20 = vsel %vm1046_vm1, %v1080_v10, 0.0  ;;  %v1403_v21 = vadd.f32 %v1036_v0, %v670_v18 }
 0x125   : > { %v1092_v22 = vadd.f32 %v1091_v20, %v1090_v15  ;;  %1054 = vst.msk [vmem:[%s1624_s6 + $0x38] sm:$0xff] %vm1046_vm1, %v1402_v17  ;;  %v1065_v23 = vadd.f32 %v1064_v19, %v1063_v14  ;;  %v1083_v25 = vmul.f32 %v1402_v17, %v1402_v17  ;;  %v1068_v30 = vsel %vm1046_vm1, %v1402_v17, 0.0 }
 0x126   : > { %1053 = vst.msk [vmem:[%s1624_s6 + $0x30] sm:$0xff] %vm1046_vm1, %v1403_v21  ;;  %v1066_v26 = vsel %vm1046_vm1, %v1403_v21, 0.0  ;;  %v1082_v27 = vmul.f32 %v1403_v21, %v1403_v21 }
 0x127   : > { %v1067_v28 = vadd.f32 %v1066_v26, %v1065_v23  ;;  %v1094_v29 = vadd.f32 %v1093_v24, %v1092_v22  ;;  %v1097_v5 = vsel %vm1046_vm1, %v1083_v25, 0.0 }
 0x128   : > { %v1095_v16 = vsel %vm1046_vm1, %v1082_v27, 0.0 }
 0x129   : > { %v1069_v31 = vadd.f32 %v1068_v30, %v1067_v28  ;;  %v1096_v32 = vadd.f32 %v1095_v16, %v1094_v29 }
 0x12b   : > { %v1070_v6 = vrot.slane %v1069_v31, 4  ;;  %v1098_v34 = vadd.f32 %v1097_v5, %v1096_v32 }
 0x12d   : > { %v1071_v35 = vadd.f32 %v1070_v6, %v1069_v31  ;;  %v1099_v4 = vrot.slane %v1098_v34, 4 }
 0x12f   : > { %v1072_v33 = vrot.slane %v1071_v35, 2  ;;  %v1100_v36 = vadd.f32 %v1099_v4, %v1098_v34 }
 0x131   : > { %v1073_v37 = vadd.f32 %v1072_v33, %v1071_v35  ;;  %v1101_v38 = vrot.slane %v1100_v36, 2 }
 0x133   : > { %v1074_v39 = vrot.slane %v1073_v37, 1  ;;  %v1102_v40 = vadd.f32 %v1101_v38, %v1100_v36 }
 0x135   : > { %v1103_v41 = vrot.slane %v1102_v40, 1  ;;  %v1075_v42 = vadd.f32 %v1074_v39, %v1073_v37 }
 0x137   : > { %v1104_v43 = vadd.f32 %v1103_v41, %v1102_v40 }
 0x139   : > { %v1106_v44 = vsel %vm1105_vm2, %v1075_v42, %v1104_v43 }
 0x13a   : > { %1108 = vst.msk [vmem:[%s216_s10] sm:$0x3] %vm1107_vm3, %v1106_v44 }
 0x13b PF: > { %s15_s15 = sadd.s32 1, %s1450_s15  }
 0x13c   : > { %p12_p5 = scmp.ge.s32.totalorder %s15_s15, 10  }
 0x13e   :  { %14 = sbr.rel (!%p12_p5) target bundleno = 1 (0x1), region = 74 }

// kernel: decoder_block.4
= control target key start
LH: loop header
LB: loop body
LE: loop exit
PB: predicated region body
PF: predicated region fallthrough
CT: control target
= control target key end

     0   :  { %s4699_s27 = smov 0   ;;  %s5395_s0 = inlined_call_operand.vmem [shape: f32[32,16,4], index: 0, kind: input, shape index: {}, may-alias: {0,1}]   ;;  %s5396_s1 = inlined_call_operand.vmem [shape: f32[32,16,4], index: 1, kind: input, shape index: {}, may-alias: {0,1}]   ;;  %s5397_s2 = inlined_call_operand.vmem [shape: f32[2,4], index: 2, kind: input, shape index: {}]   ;;  %s5398_s3 = inlined_call_operand.vmem [shape: f32[4,16], index: 3, kind: input, shape index: {}]   ;;  %s5399_s4 = inlined_call_operand.vmem [shape: f32[4,16], index: 4, kind: input, shape index: {}]   ;;  %s5400_s5 = inlined_call_operand.vmem [shape: f32[4,16], index: 5, kind: input, shape index: {}]   ;;  %s5401_s6 = inlined_call_operand.vmem [shape: f32[4,16], index: 6, kind: input, shape index: {}]   ;;  %s5402_s7 = inlined_call_operand.vmem [shape: f32[32,16,16], index: 7, kind: output, shape index: {0}]   ;;  %s5403_s8 = inlined_call_operand.vmem [shape: f32[8,2,16], index: 8, kind: output, shape index: {1}]  }
   0x1 LB: > { %s4705_s28 = sadd.s32 4294967295, %s4651_s27   ;;  %p3878_p0 = scmp.ge.s32.totalorder %s4651_s27, 1  ;;  %s4651_s27 = sphi %s4699_s27, %s19_s27  }
   0x2   : > { %p293_p1 = scmp.lt.s32.totalorder %s4651_s27, 9 }
   0x4   : > { %p294_p2 = pnand %p3878_p0, %p293_p1 }
   0x6   : > { %297 = sbr.rel (%p294_p2) target bundleno = 484 (0x1e4), region = 48 }
   0xd   : > { %v587_v0 = vld [vmem:[%s5400_s5] sm:$0xf]  ;;  %vm612_vm0 = vcmask 1043456   ;;  %s4716_s11 = sshll.u32 %s4705_s28, 2  ;;  %p423_p4 = scmp.lt.s32.totalorder %s4705_s28, 0  ;;  %vm452_vm1 = vcmask 24576  }
   0xe   : > { %v1371_v1 = vld [vmem:[%s5401_s6] sm:$0xf]  ;;  %v614_v2 = vsel %vm612_vm0, %v587_v0, 0  ;;  %p343_p3 = scmp.lt.s32.totalorder %s4716_s11, 31  ;;  %s3905_s12 = sadd.s32 4, %s4716_s11  ;;  %v4653_v8 = vmov 0.0  }
   0xf   : > { %v1397_v3 = vsel %vm612_vm0, %v1371_v1, 0  ;;  %v4721_v4 = vand.u32 4294901760, %v614_v2  ;;  %p4738_p5 = scmp.lt.s32.totalorder %s3905_s12, 31  ;;  %s424_s14 = ssub.s32 0, %s4705_s28  ;;  %453 = vst.msk [vmem:[#allocation2 + $0x50] sm:$0x1] %vm452_vm1, %v4653_v8 }
  0x10   : > { %v4723_v5 = vand.u32 4294901760, %v1397_v3  ;;  %s5462_s11 = smov (!%p343_p3, %s4716_s11), 31  ;;  %v3892_v9 = vld [vmem:[%s5397_s2] ss:$0 sm:$0xff]  ;;  %s4750_s18 = smin.u32 %s4705_s28, %s424_s14  ;;  %v4762_v10 = vld [vmem:[%s5397_s2 + $0x1] ss:$0 sm:$0xff] }
  0x11   : > { %4124 = vmatprep.subr.mxu0 %v4721_v4  ;;  %v4733_v6 = vsub.f32 %v614_v2, %v4721_v4  ;;  %s3903_s15 = sshll.u32 %s5462_s11, 4  ;;  %s426_s24 = sand.u32 3, %s4750_s18   ;;  %vm441_vm2 = vcmask 31744   ;;  %vm3708_vm5 = vcmask 130048   ;;  %vm3767_vm9 = vcmask 1040384  }
  0x12   : > { %4208 = vmatprep.subr.mxu1 %v4723_v5  ;;  %v4736_v7 = vsub.f32 %v1397_v3, %v4723_v5  ;;  %4125 = vmatpush3.msra.mxu0 %v4721_v4  ;;  %s4757_s21 = scalar_lea.vmem %s5395_s0, %s3903_s15  ;;  %s5464_s12 = smov (!%p4738_p5, %s3905_s12), 31  ;;  %vm3769_vm10 = vcmask 123904  }
  0x13   : > { %4209 = vmatpush3.msra.mxu1 %v4723_v5  ;;  %v4765_v11 = vand.u32 4294901760, %v4733_v6  ;;  %v377_v13 = vld [vmem:[%s4757_s21 + $0x10] sm:$0xff]  ;;  %v378_v14 = vld [vmem:[%s4757_s21 + $0x18] sm:$0xff]  ;;  %v379_v15 = vld [vmem:[%s4757_s21 + $0x20] sm:$0xff]  ;;  %s427_s25 = ssub.s32 0, %s426_s24  ;;  %s5466_s12 = smov (!%p4738_p5, %s5464_s12), 31 }
  0x14   : > { %v4768_v12 = vand.u32 4294901760, %v4736_v7  ;;  %v389_v16 = vmul.f32 %v3892_v9, %v377_v13  ;;  %v390_v18 = vmul.f32 %v3892_v9, %v378_v14  ;;  %v380_v20 = vld [vmem:[%s4757_s21 + $0x28] sm:$0xff]  ;;  %v381_v21 = vld [vmem:[%s4757_s21 + $0x30] sm:$0xff]  ;;  %v382_v22 = vld [vmem:[%s4757_s21 + $0x38] sm:$0xff]  ;;  %v391_v23 = vmul.f32 %v3892_v9, %v379_v15  ;;  %s5468_s25 = smov (!%p423_p4, %s427_s25), %s426_s24  ;;  %s3906_s26 = sshll.u32 %s5466_s12, 4 }
  0x15   : > { %v766_v17 = vsub.f32 %v4733_v6, %v4765_v11  ;;  %v392_v24 = vmul.f32 %v3892_v9, %v380_v20  ;;  %v393_v25 = vmul.f32 %v3892_v9, %v381_v21  ;;  %v394_v26 = vmul.f32 %v3892_v9, %v382_v22  ;;  %v375_v27 = vld [vmem:[%s4757_s21] sm:$0xff]  ;;  %v376_v36 = vld [vmem:[%s4757_s21 + $0x8] sm:$0xff]  ;;  %s357_s9 = scalar_lea.vmem %s5396_s1, %s3906_s26  ;;  %p3896_p6 = scmp.lt.s32.totalorder %s5468_s25, 0 }
  0x16   : > { %v1549_v19 = vsub.f32 %v4736_v7, %v4768_v12  ;;  %v401_v28 = vadd.f32 %v4762_v10, %v389_v16  ;;  %v402_v30 = vadd.f32 %v4762_v10, %v390_v18  ;;  %v403_v32 = vadd.f32 %v4762_v10, %v391_v23  ;;  %v415_v44 = vld [vmem:[%s357_s9] sm:$0xff]  ;;  %s433_s10 = sadd.s32 4, %s5468_s25  ;;  %v416_v46 = vld [vmem:[%s357_s9 + $0x8] sm:$0xff]  ;;  %s5335_s20 = scalar_lea.vmem %s5402_s7, %s3903_s15 }
  0x17   : > { %v4787_v29 = vand.u32 4294901760, %v766_v17  ;;  %v404_v33 = vadd.f32 %v4762_v10, %v392_v24  ;;  %v405_v34 = vadd.f32 %v4762_v10, %v393_v25  ;;  %v406_v35 = vadd.f32 %v4762_v10, %v394_v26  ;;  %s5470_s10 = smov (!%p3896_p6, %s433_s10), %s5468_s25  ;;  %p369_p8 = scmp.lt.s32.totalorder %s4705_s28, 7 }
  0x18   : > { %v4790_v31 = vand.u32 4294901760, %v1549_v19  ;;  %v409_v37 = vmax.f32 %v401_v28, 0.0  ;;  %v410_v38 = vmax.f32 %v402_v30, 0.0  ;;  %v387_v39 = vmul.f32 %v3892_v9, %v375_v27  ;;  %p435_p7 = scmp.eq.s32.totalorder %s5470_s10, 3 }
  0x19   : > { %4138 = vmatprep.subr.mxu0 %v4787_v29  ;;  %v411_v40 = vmax.f32 %v403_v32, 0.0  ;;  %v412_v41 = vmax.f32 %v404_v33, 0.0  ;;  %v413_v42 = vmax.f32 %v405_v34, 0.0  ;;  %v414_v43 = vmax.f32 %v406_v35, 0.0  ;;  %s5472_s28 = smov (!%p369_p8, %s4705_s28), 7 }
  0x1a   : > { %4222 = vmatprep.subr.mxu1 %v4790_v31  ;;  %444 = vst.msk [vmem:[#allocation2 + $0x10] sm:$0xff] %vm441_vm2, %v409_v37  ;;  %445 = vst.msk [vmem:[#allocation2 + $0x18] sm:$0xff] %vm441_vm2, %v410_v38  ;;  %v417_v45 = vmul.f32 %v3892_v9, %v415_v44  ;;  %v399_v47 = vadd.f32 %v4762_v10, %v387_v39  ;;  %v388_v48 = vmul.f32 %v3892_v9, %v376_v36  ;;  %s436_s12 = scalar_select %p435_p7, 1, 0 }
  0x1b   : > { %446 = vst.msk [vmem:[#allocation2 + $0x20] sm:$0xff] %vm441_vm2, %v411_v40  ;;  %447 = vst.msk [vmem:[#allocation2 + $0x28] sm:$0xff] %vm441_vm2, %v412_v41  ;;  %v418_v49 = vmul.f32 %v3892_v9, %v416_v46  ;;  %s3891_s11 = sshll.u32 %s5472_s28, 1 }
  0x1c   : > { %448 = vst.msk [vmem:[#allocation2 + $0x30] sm:$0xff] %vm441_vm2, %v413_v42  ;;  %449 = vst.msk [vmem:[#allocation2 + $0x38] sm:$0xff] %vm441_vm2, %v414_v43  ;;  %v407_v50 = vmax.f32 %v399_v47, 0.0  ;;  %v400_v51 = vadd.f32 %v4762_v10, %v388_v48  ;;  %v4813_v52 = vadd.f32 %v4762_v10, %v417_v45  ;;  %v437_v59 = vstv %s436_s12  ;;  %s372_s22 = scalar_lea.vmem %s5403_s8, %s3891_s11 }
  0x1d   : > { %v4816_v53 = vadd.f32 %v4762_v10, %v418_v49  ;;  %vm4837_vm3 = vcmp.eq.s32.totalorder %v437_v59, 1 }
  0x1e   : > { %442 = vst.msk [vmem:[#allocation2] sm:$0xff] %vm441_vm2, %v407_v50  ;;  %v408_v54 = vmax.f32 %v400_v51, 0.0  ;;  %v421_v58 = vmax.f32 %v4813_v52, 0.0 }
  0x1f   : > { %v422_v60 = vmax.f32 %v4816_v53, 0.0 }
  0x20   : > { %443 = vst.msk [vmem:[#allocation2 + $0x8] sm:$0xff] %vm441_vm2, %v408_v54 }
  0x21   : > { %v569_v55 = vld [vmem:[#allocation2 + $0x10] sm:$0xff]  ;;  %v570_v57 = vld [vmem:[#allocation2 + $0x18] sm:$0xff] }
  0x22   : > { %v1363_v56 = vld [vmem:[#allocation2 + $0x11] sm:$0xff]  ;;  %v589_v61 = vsel %vm441_vm2, %v569_v55, 0  ;;  %v592_v63 = vsel %vm441_vm2, %v570_v57, 0  ;;  %v1364_v0 = vld [vmem:[#allocation2 + $0x19] sm:$0xff]  ;;  %v1365_v2 = vld [vmem:[#allocation2 + $0x21] sm:$0xff] }
  0x23   : > { %v1373_v62 = vsel %vm441_vm2, %v1363_v56, 0  ;;  %v571_v1 = vld [vmem:[#allocation2 + $0x20] sm:$0xff]  ;;  %v4825_v3 = vand.u32 4294901760, %v589_v61  ;;  %v4829_v9 = vand.u32 4294901760, %v592_v63  ;;  %v1376_v10 = vsel %vm441_vm2, %v1364_v0, 0  ;;  %v572_v13 = vld [vmem:[#allocation2 + $0x28] sm:$0xff] }
  0x24   : > { %v4827_v8 = vand.u32 4294901760, %v1373_v62  ;;  %v1366_v14 = vld [vmem:[#allocation2 + $0x29] sm:$0xff]  ;;  %v4832_v15 = vand.u32 4294901760, %v1376_v10  ;;  %v595_v16 = vsel %vm441_vm2, %v571_v1, 0  ;;  %v1379_v17 = vsel %vm441_vm2, %v1365_v2, 0  ;;  %v1367_v47 = vld [vmem:[#allocation2 + $0x31] sm:$0xff] }
  0x25   : > { %v598_v18 = vsel %vm441_vm2, %v572_v13, 0  ;;  %v4842_v20 = vsub.f32 %v589_v61, %v4825_v3  ;;  %v4848_v22 = vsub.f32 %v592_v63, %v4829_v9  ;;  %v4850_v23 = vand.u32 4294901760, %v595_v16  ;;  %v573_v46 = vld [vmem:[#allocation2 + $0x30] sm:$0xff]  ;;  %v574_v48 = vld [vmem:[#allocation2 + $0x38] sm:$0xff] }
  0x26   : > { %v4845_v21 = vsub.f32 %v1373_v62, %v4827_v8  ;;  %v4853_v24 = vsub.f32 %v1376_v10, %v4832_v15  ;;  %v4855_v25 = vand.u32 4294901760, %v1379_v17  ;;  %v4857_v26 = vand.u32 4294901760, %v598_v18 }
  0x27   : > { %v1382_v27 = vsel %vm441_vm2, %v1366_v14, 0  ;;  %v4861_v28 = vand.u32 4294901760, %v4842_v20  ;;  %v4867_v32 = vand.u32 4294901760, %v4848_v22  ;;  %v4870_v33 = vsub.f32 %v595_v16, %v4850_v23 }
  0x28   : > { %v4864_v30 = vand.u32 4294901760, %v4845_v21  ;;  %v4873_v34 = vand.u32 4294901760, %v4853_v24  ;;  %v4876_v35 = vsub.f32 %v1379_v17, %v4855_v25  ;;  %v4879_v36 = vsub.f32 %v598_v18, %v4857_v26 }
  0x29   : > { %v4881_v37 = vand.u32 4294901760, %v1382_v27  ;;  %v685_v38 = vsub.f32 %v4842_v20, %v4861_v28  ;;  %v695_v40 = vsub.f32 %v4848_v22, %v4867_v32  ;;  %v4890_v41 = vand.u32 4294901760, %v4870_v33 }
  0x2a   : > { %v1468_v39 = vsub.f32 %v4845_v21, %v4864_v30  ;;  %v1478_v42 = vsub.f32 %v4853_v24, %v4873_v34  ;;  %v4895_v43 = vand.u32 4294901760, %v4876_v35  ;;  %v4898_v44 = vand.u32 4294901760, %v4879_v36 }
  0x2b   : > { %v4901_v45 = vsub.f32 %v1382_v27, %v4881_v37  ;;  %v4903_v49 = vand.u32 4294901760, %v685_v38  ;;  %v4907_v51 = vand.u32 4294901760, %v695_v40  ;;  %v705_v54 = vsub.f32 %v4870_v33, %v4890_v41 }
  0x2c   : > { %v4905_v50 = vand.u32 4294901760, %v1468_v39  ;;  %v4911_v55 = vand.u32 4294901760, %v1478_v42  ;;  %v1488_v56 = vsub.f32 %v4876_v35, %v4895_v43  ;;  %v715_v57 = vsub.f32 %v4879_v36, %v4898_v44 }
  0x2d   : > { %5425 = vst [vmem:[#allocation4_spill] sm:$0xff] %v4907_v51  ;;  %v4918_v59 = vand.u32 4294901760, %v4901_v45  ;;  %4126 = vmatprep.mubr.f32.mxu0 %v4903_v49  ;;  %v4922_v61 = vand.u32 4294901760, %v705_v54  ;;  %v601_v62 = vsel %vm441_vm2, %v573_v46, 0  ;;  %v1385_v63 = vsel %vm441_vm2, %v1367_v47, 0 }
  0x2e   : > { %5424 = vst [vmem:[#allocation3_spill] sm:$0xff] %v4905_v50  ;;  %5426 = vst [vmem:[#allocation5_spill] sm:$0xff] %v4911_v55  ;;  %4210 = vmatprep.mubr.f32.mxu1 %v4905_v50  ;;  %v604_v0 = vsel %vm441_vm2, %v574_v48, 0  ;;  %4127 = vmatmul.mubr.f32.vlgmr.msra.gmra.mrb[0].mxu0 %v4907_v51  ;;  %v4929_v1 = vand.u32 4294901760, %v1488_v56  ;;  %v4931_v2 = vand.u32 4294901760, %v715_v57  ;;  %v4935_v13 = vand.u32 4294901760, %v601_v62 }
  0x2f   : > { %5427 = vst [vmem:[#allocation6_spill] sm:$0xff] %v4918_v59  ;;  %5428 = vst [vmem:[#allocation7_spill] sm:$0xff] %v4922_v61  ;;  %4211 = vmatmul.mubr.f32.vlgmr.msra.gmra.mrb[0].mxu1 %v4911_v55  ;;  %v1498_v10 = vsub.f32 %v4901_v45, %v4918_v59  ;;  %4139 = vmatpush3.msra.mxu0 %v4787_v29  ;;  %v4939_v14 = vand.u32 4294901760, %v1385_v63  ;;  %v4941_v16 = vand.u32 4294901760, %v604_v0  ;;  %v439_v17 = vsel %vm4837_vm3, 0.0, %v421_v58 }
  0x30   : > { %5429 = vst [vmem:[#allocation8_spill] sm:$0xff] %v4929_v1  ;;  %5430 = vst [vmem:[#allocation9_spill] sm:$0xff] %v4931_v2  ;;  %4223 = vmatpush3.msra.mxu1 %v4790_v31  ;;  %v440_v18 = vsel %vm4837_vm3, 0.0, %v422_v60  ;;  %4129 = vmatprep.mubr.f32.mxu0 %v4922_v61  ;;  %v4956_v31 = vsub.f32 %v601_v62, %v4935_v13 }
  0x31   : > { %4213 = vmatprep.mubr.f32.mxu1 %v4929_v1  ;;  %v4953_v29 = vand.u32 4294901760, %v1498_v10  ;;  %450 = vst.msk [vmem:[#allocation2 + $0x40] sm:$0xff] %vm441_vm2, %v439_v17  ;;  %451 = vst.msk [vmem:[#allocation2 + $0x48] sm:$0xff] %vm441_vm2, %v440_v18  ;;  %v4961_v52 = vsub.f32 %v1385_v63, %v4939_v14  ;;  %v4964_v53 = vsub.f32 %v604_v0, %v4941_v16  ;;  %4152 = vmatprep.subr.mxu0 %v4733_v6 }
  0x32   : > { %4236 = vmatprep.subr.mxu1 %v4736_v7  ;;  %4130 = vmatmul.mubr.f32.gmra.mrb[2].mxu0 %v4931_v2  ;;  %v4971_v58 = vand.u32 4294901760, %v4956_v31 }
  0x33   : > { %5431 = vst [vmem:[#allocation10_spill] sm:$0xff] %v4953_v29  ;;  %4214 = vmatmul.mubr.f32.gmra.mrb[2].mxu1 %v4953_v29  ;;  %v4974_v60 = vand.u32 4294901760, %v4961_v52  ;;  %v4977_v19 = vand.u32 4294901760, %v4964_v53 }
  0x34   : > { %v725_v27 = vsub.f32 %v4956_v31, %v4971_v58 }
  0x35   : > { %5432 = vst [vmem:[#allocation11_spill] sm:$0xff] %v4974_v60  ;;  %5433 = vst [vmem:[#allocation12_spill] sm:$0xff] %v4977_v19  ;;  %v1508_v38 = vsub.f32 %v4961_v52, %v4974_v60  ;;  %v735_v39 = vsub.f32 %v4964_v53, %v4977_v19 }
  0x36   : > { %v4985_v40 = vand.u32 4294901760, %v725_v27 }
  0x37   : > { %v4987_v42 = vand.u32 4294901760, %v1508_v38  ;;  %v4989_v46 = vand.u32 4294901760, %v735_v39 }
  0x38   : > { %5434 = vst [vmem:[#allocation13_spill] sm:$0xff] %v4985_v40  ;;  %v1368_v47 = vld [vmem:[#allocation2 + $0x39] sm:$0xff]  ;;  %v1369_v54 = vld [vmem:[#allocation2 + $0x41] sm:$0xff]  ;;  %4132 = vmatprep.mubr.f32.mxu0 %v4985_v40  ;;  %v1370_v0 = vld [vmem:[#allocation2 + $0x49] sm:$0xff] }
  0x39   : > { %5435 = vst [vmem:[#allocation14_spill] sm:$0xff] %v4987_v42  ;;  %5436 = vst [vmem:[#allocation15_spill] sm:$0xff] %v4989_v46  ;;  %v585_v48 = vld [vmem:[#allocation2 + $0x40] sm:$0xff]  ;;  %v1388_v56 = vsel %vm441_vm2, %v1368_v47, 0  ;;  %v1391_v62 = vsel %vm441_vm2, %v1369_v54, 0  ;;  %v586_v63 = vld [vmem:[#allocation2 + $0x48] sm:$0xff]  ;;  %4216 = vmatprep.mubr.f32.mxu1 %v4987_v42  ;;  %4133 = vmatmul.mubr.f32.gmra.mrb[4].mxu0 %v4989_v46 }
  0x3a   : > { %v607_v57 = vsel %vm441_vm2, %v585_v48, 0  ;;  %v4997_v10 = vand.u32 4294901760, %v1388_v56  ;;  %v5001_v18 = vand.u32 4294901760, %v1391_v62  ;;  %v610_v27 = vsel %vm441_vm2, %v586_v63, 0 }
  0x3b   : > { %v4999_v17 = vand.u32 4294901760, %v607_v57  ;;  %v5004_v38 = vand.u32 4294901760, %v610_v27  ;;  %v1394_v39 = vsel %vm441_vm2, %v1370_v0, 0 }
  0x3c   : > { %v5008_v47 = vsub.f32 %v1388_v56, %v4997_v10  ;;  %v5014_v54 = vsub.f32 %v1391_v62, %v5001_v18  ;;  %v5016_v46 = vand.u32 4294901760, %v1394_v39 }
  0x3d   : > { %v5011_v48 = vsub.f32 %v607_v57, %v4999_v17  ;;  %v5019_v42 = vsub.f32 %v610_v27, %v5004_v38 }
  0x3e   : > { %v5022_v63 = vand.u32 4294901760, %v5008_v47  ;;  %v1527_v0 = vand.u32 4294901760, %v5014_v54  ;;  %v5027_v56 = vsub.f32 %v1394_v39, %v5016_v46 }
  0x3f   : > { %v5414_v29 = vand.u32 4294901760, %v5011_v48  ;;  %v754_v57 = vand.u32 4294901760, %v5019_v42 }
  0x40   : > { %5437 = vst [vmem:[#allocation16_spill] sm:$0xff] %v5022_v63  ;;  %v1518_v62 = vsub.f32 %v5008_v47, %v5022_v63  ;;  %v1528_v40 = vsub.f32 %v5014_v54, %v1527_v0  ;;  %v1537_v2 = vand.u32 4294901760, %v5027_v56 }
  0x41   : > { %v745_v27 = vsub.f32 %v5011_v48, %v5414_v29  ;;  %v755_v39 = vsub.f32 %v5019_v42, %v754_v57 }
  0x42   : > { %v5042_v1 = vand.u32 4294901760, %v1518_v62  ;;  %v1529_v61 = vand.u32 4294901760, %v1528_v40  ;;  %v1538_v51 = vsub.f32 %v5027_v56, %v1537_v2 }
  0x43   : > { %v746_v55 = vand.u32 4294901760, %v745_v27  ;;  %v756_v50 = vand.u32 4294901760, %v755_v39 }
  0x44   : > { %4217 = vmatmul.mubr.f32.gmra.mrb[4].mxu1 %v5042_v1  ;;  %v1539_v29 = vand.u32 4294901760, %v1538_v51 }
  0x45   : > { %4135 = vmatprep.mubr.f32.mxu0 %v746_v55  ;;  %4219 = vmatprep.mubr.f32.mxu1 %v1529_v61 }
  0x46   : > { %4136 = vmatmul.mubr.f32.gmra.mrb[6].mxu0 %v756_v50 }
  0x47   : > { %4140 = vmatprep.mubr.f32.mxu0 %v4825_v3 }
  0x48   : > { %4220 = vmatmul.mubr.f32.gmra.mrb[6].mxu1 %v1539_v29  ;;  %v576_v29 = vld [vmem:[#allocation2 + $0x1] sm:$0xff] }
  0x49   : > { %4224 = vmatprep.mubr.f32.mxu1 %v4827_v8 }
  0x4a   : > { %4141 = vmatmul.mubr.f32.vlgmr.msra.gmra.mrb[0].mxu0 %v4829_v9 }
  0x4b   : > { %4153 = vmatpush3.msra.mxu0 %v4733_v6  ;;  %4143 = vmatprep.mubr.f32.mxu0 %v4850_v23  ;;  %v575_v6 = vld [vmem:[%s5398_s3] sm:$0xf] }
  0x4c   : > { %4166 = vmatprep.subr.mxu0 %v4721_v4  ;;  %4225 = vmatmul.mubr.f32.vlgmr.msra.gmra.mrb[0].mxu1 %v4832_v15 }
  0x4d   : > { %4237 = vmatpush3.msra.mxu1 %v4736_v7  ;;  %4227 = vmatprep.mubr.f32.mxu1 %v4855_v25  ;;  %v5438_v7 = vand.u32 4294901760, %v5011_v48 }
  0x4e   : > { %4144 = vmatmul.mubr.f32.gmra.mrb[2].mxu0 %v4857_v26  ;;  %4250 = vmatprep.subr.mxu1 %v4723_v5 }
  0x4f   : > { %4146 = vmatprep.mubr.f32.mxu0 %v4935_v13 }
  0x50   : > { %4228 = vmatmul.mubr.f32.gmra.mrb[2].mxu1 %v4881_v37 }
  0x51   : > { %4230 = vmatprep.mubr.f32.mxu1 %v4939_v14 }
  0x52   : > { %4147 = vmatmul.mubr.f32.gmra.mrb[4].mxu0 %v4941_v16 }
  0x53   : > { %4149 = vmatprep.mubr.f32.mxu0 %v4999_v17 }
  0x54   : > { %4231 = vmatmul.mubr.f32.gmra.mrb[4].mxu1 %v4997_v10 }
  0x55   : > { %4233 = vmatprep.mubr.f32.mxu1 %v5001_v18 }
  0x56   : > { %4150 = vmatmul.mubr.f32.gmra.mrb[6].mxu0 %v5004_v38 }
  0x57   : > { %4154 = vmatprep.mubr.f32.mxu0 %v4842_v20 }
  0x58   : > { %4234 = vmatmul.mubr.f32.gmra.mrb[6].mxu1 %v5016_v46 }
  0x59   : > { %4238 = vmatprep.mubr.f32.mxu1 %v4845_v21 }
  0x5a   : > { %4155 = vmatmul.mubr.f32.vlgmr.msra.gmra.mrb[0].mxu0 %v4848_v22 }
  0x5b   : > { %4167 = vmatpush3.msra.mxu0 %v4721_v4  ;;  %4157 = vmatprep.mubr.f32.mxu0 %v4870_v33 }
  0x5c   : > { %4239 = vmatmul.mubr.f32.vlgmr.msra.gmra.mrb[0].mxu1 %v4853_v24  ;;  %4180 = vmatprep.subr.mxu0 %v4765_v11 }
  0x5d   : > { %4251 = vmatpush3.msra.mxu1 %v4723_v5  ;;  %4241 = vmatprep.mubr.f32.mxu1 %v4876_v35 }
  0x5e   : > { %4158 = vmatmul.mubr.f32.gmra.mrb[2].mxu0 %v4879_v36  ;;  %4264 = vmatprep.subr.mxu1 %v4768_v12 }
  0x5f   : > { %4160 = vmatprep.mubr.f32.mxu0 %v4956_v31 }
  0x60   : > { %4242 = vmatmul.mubr.f32.gmra.mrb[2].mxu1 %v4901_v45 }
  0x61   : > { %4244 = vmatprep.mubr.f32.mxu1 %v4961_v52 }
  0x62   : > { %4161 = vmatmul.mubr.f32.gmra.mrb[4].mxu0 %v4964_v53 }
  0x63   : > { %4163 = vmatprep.mubr.f32.mxu0 %v5011_v48  ;;  %v2903_v48 = vsel %vm441_vm2, %v576_v29, 0 }
  0x64   : > { %4245 = vmatmul.mubr.f32.gmra.mrb[4].mxu1 %v5008_v47  ;;  %v5161_v27 = vand.u32 4294901760, %v2903_v48 }
  0x65   : > { %4247 = vmatprep.mubr.f32.mxu1 %v5014_v54 }
  0x66   : > { %4164 = vmatmul.mubr.f32.gmra.mrb[6].mxu0 %v5019_v42 }
  0x67   : > { %4168 = vmatprep.mubr.f32.mxu0 %v4861_v28 }
  0x68   : > { %4248 = vmatmul.mubr.f32.gmra.mrb[6].mxu1 %v5027_v56 }
  0x69   : > { %4252 = vmatprep.mubr.f32.mxu1 %v4864_v30 }
  0x6a   : > { %4169 = vmatmul.mubr.f32.vlgmr.msra.gmra.mrb[0].mxu0 %v4867_v32 }
  0x6b   : > { %4181 = vmatpush3.msra.mxu0 %v4765_v11  ;;  %4171 = vmatprep.mubr.f32.mxu0 %v4890_v41  ;;  %v584_v11 = vld [vmem:[%s5399_s4] sm:$0xf] }
  0x6c   : > { %4253 = vmatmul.mubr.f32.vlgmr.msra.gmra.mrb[0].mxu1 %v4873_v34  ;;  %4194 = vmatprep.subr.mxu0 %v4721_v4  ;;  %v2927_v50 = vsel %vm612_vm0, %v584_v11, 0 }
  0x6d   : > { %4265 = vmatpush3.msra.mxu1 %v4768_v12  ;;  %4255 = vmatprep.mubr.f32.mxu1 %v4895_v43  ;;  %v2153_v12 = vsel %vm612_vm0, %v575_v6, 0  ;;  %v5125_v55 = vand.u32 4294901760, %v2927_v50 }
  0x6e   : > { %4172 = vmatmul.mubr.f32.gmra.mrb[2].mxu0 %v4898_v44  ;;  %4278 = vmatprep.subr.mxu1 %v4723_v5  ;;  %v5121_v51 = vand.u32 4294901760, %v2153_v12 }
  0x6f   : > { %4174 = vmatprep.mubr.f32.mxu0 %v4971_v58 }
  0x70   : > { %4256 = vmatmul.mubr.f32.gmra.mrb[2].mxu1 %v4918_v59  ;;  %v5132_v61 = vsub.f32 %v2153_v12, %v5121_v51 }
  0x71   : > { %4258 = vmatprep.mubr.f32.mxu1 %v4974_v60 }
  0x72   : > { %4175 = vmatmul.mubr.f32.gmra.mrb[4].mxu0 %v4977_v19  ;;  %v5145_v42 = vand.u32 4294901760, %v5132_v61 }
  0x73   : > { %4177 = vmatprep.mubr.f32.mxu0 %v5438_v7 }
  0x74   : > { %4259 = vmatmul.mubr.f32.gmra.mrb[4].mxu1 %v5022_v63  ;;  %v2305_v62 = vsub.f32 %v5132_v61, %v5145_v42 }
  0x75   : > { %4261 = vmatprep.mubr.f32.mxu1 %v1527_v0  ;;  %v577_v0 = vld [vmem:[#allocation2 + $0x9] sm:$0xff] }
  0x76   : > { %4178 = vmatmul.mubr.f32.gmra.mrb[6].mxu0 %v754_v57  ;;  %v2906_v39 = vsel %vm441_vm2, %v577_v0, 0  ;;  %v2306_v12 = vand.u32 4294901760, %v2305_v62 }
  0x77   : > { %4182 = vmatprep.mubr.f32.mxu0 %v4825_v3 }
  0x78   : > { %4262 = vmatmul.mubr.f32.gmra.mrb[6].mxu1 %v1537_v2  ;;  %v567_v2 = vld [vmem:[#allocation2] sm:$0xff] }
  0x79   : > { %4266 = vmatprep.mubr.f32.mxu1 %v4827_v8  ;;  %v2147_v40 = vsel %vm441_vm2, %v567_v2, 0  ;;  %v5178_v2 = vsub.f32 %v2903_v48, %v5161_v27 }
  0x7a   : > { %4183 = vmatmul.mubr.f32.vlgmr.msra.gmra.mrb[0].mxu0 %v4829_v9  ;;  %v5154_v56 = vand.u32 4294901760, %v2147_v40 }
  0x7b   : > { %4195 = vmatpush3.msra.mxu0 %v4721_v4  ;;  %4185 = vmatprep.mubr.f32.mxu0 %v4850_v23  ;;  %v5139_v4 = vsub.f32 %v2927_v50, %v5125_v55  ;;  %v5174_v50 = vand.u32 4294901760, %v2906_v39  ;;  %v5419_v48 = vand.u32 4294901760, %v5178_v2 }
  0x7c   : > { %4267 = vmatmul.mubr.f32.vlgmr.msra.gmra.mrb[0].mxu1 %v4832_v15  ;;  %4292 = vmatprep.subr.mxu0 %v5121_v51  ;;  %v5171_v11 = vsub.f32 %v2147_v40, %v5154_v56 }
  0x7d   : > { %4279 = vmatpush3.msra.mxu1 %v4723_v5  ;;  %4269 = vmatprep.mubr.f32.mxu1 %v4855_v25  ;;  %v568_v5 = vld [vmem:[#allocation2 + $0x8] sm:$0xff]  ;;  %v5151_v54 = vand.u32 4294901760, %v5139_v4  ;;  %v5189_v0 = vsub.f32 %v2906_v39, %v5174_v50 }
  0x7e   : > { %4186 = vmatmul.mubr.f32.gmra.mrb[2].mxu0 %v4857_v26  ;;  %4376 = vmatprep.subr.mxu1 %v5125_v55  ;;  %v2150_v57 = vsel %vm441_vm2, %v568_v5, 0  ;;  %v5417_v40 = vand.u32 4294901760, %v5171_v11 }
  0x7f   : > { %4188 = vmatprep.mubr.f32.mxu0 %v4935_v13  ;;  %v3079_v6 = vsub.f32 %v5139_v4, %v5151_v54  ;;  %v5167_v7 = vand.u32 4294901760, %v2150_v57  ;;  %v3007_v39 = vand.u32 4294901760, %v5189_v0 }
  0x80   : > { %4270 = vmatmul.mubr.f32.gmra.mrb[2].mxu1 %v4881_v37  ;;  %v2224_v62 = vsub.f32 %v5171_v11, %v5417_v40 }
  0x81   : > { %4272 = vmatprep.mubr.f32.mxu1 %v4939_v14  ;;  %v3080_v29 = vand.u32 4294901760, %v3079_v6  ;;  %v5182_v5 = vsub.f32 %v2150_v57, %v5167_v7  ;;  %v2998_v6 = vsub.f32 %v5178_v2, %v5419_v48  ;;  %v3008_v40 = vsub.f32 %v5189_v0, %v3007_v39 }
  0x82   : > { %4189 = vmatmul.mubr.f32.gmra.mrb[4].mxu0 %v4941_v16  ;;  %v2225_v19 = vand.u32 4294901760, %v2224_v62 }
  0x83   : > { %4191 = vmatprep.mubr.f32.mxu0 %v4999_v17  ;;  %v2233_v57 = vand.u32 4294901760, %v5182_v5  ;;  %v2999_v60 = vand.u32 4294901760, %v2998_v6  ;;  %v3009_v59 = vand.u32 4294901760, %v3008_v40 }
  0x84   : > { %4273 = vmatmul.mubr.f32.gmra.mrb[4].mxu1 %v4997_v10 }
  0x85   : > { %4275 = vmatprep.mubr.f32.mxu1 %v5001_v18  ;;  %v2234_v63 = vsub.f32 %v5182_v5, %v2233_v57 }
  0x86   : > { %4192 = vmatmul.mubr.f32.gmra.mrb[6].mxu0 %v5004_v38 }
  0x87   : > { %4196 = vmatprep.mubr.f32.mxu0 %v4825_v3  ;;  %v2235_v48 = vand.u32 4294901760, %v2234_v63  ;;  %v5445_v63 = vld [vmem:[#allocation13_spill] sm:$0xff] }
  0x88   : > { %4276 = vmatmul.mubr.f32.gmra.mrb[6].mxu1 %v5016_v46 }
  0x89   : > { %4280 = vmatprep.mubr.f32.mxu1 %v4827_v8 }
  0x8a   : > { %4197 = vmatmul.mubr.f32.vlgmr.msra.gmra.mrb[0].mxu0 %v4829_v9 }
  0x8b   : > { %4293 = vmatpush3.msra.mxu0 %v5121_v51  ;;  %4199 = vmatprep.mubr.f32.mxu0 %v4850_v23 }
  0x8c   : > { %4281 = vmatmul.mubr.f32.vlgmr.msra.gmra.mrb[0].mxu1 %v4832_v15  ;;  %4306 = vmatprep.subr.mxu0 %v2306_v12 }
  0x8d   : > { %4377 = vmatpush3.msra.mxu1 %v5125_v55  ;;  %4283 = vmatprep.mubr.f32.mxu1 %v4855_v25 }
  0x8e   : > { %4200 = vmatmul.mubr.f32.gmra.mrb[2].mxu0 %v4857_v26  ;;  %4390 = vmatprep.subr.mxu1 %v3080_v29 }
  0x8f   : > { %4202 = vmatprep.mubr.f32.mxu0 %v4935_v13 }
  0x90   : > { %4284 = vmatmul.mubr.f32.gmra.mrb[2].mxu1 %v4881_v37 }
  0x91   : > { %4286 = vmatprep.mubr.f32.mxu1 %v4939_v14 }
  0x92   : > { %4203 = vmatmul.mubr.f32.gmra.mrb[4].mxu0 %v4941_v16 }
  0x93   : > { %4205 = vmatprep.mubr.f32.mxu0 %v4999_v17  ;;  %v5439_v17 = vld [vmem:[#allocation3_spill] sm:$0xff] }
  0x94   : > { %4287 = vmatmul.mubr.f32.gmra.mrb[4].mxu1 %v4997_v10 }
  0x95   : > { %4289 = vmatprep.mubr.f32.mxu1 %v5001_v18  ;;  %v5440_v18 = vld [vmem:[#allocation4_spill] sm:$0xff] }
  0x96   : > { %4206 = vmatmul.mubr.f32.gmra.mrb[6].mxu0 %v5004_v38  ;;  %v5441_v38 = vld [vmem:[#allocation7_spill] sm:$0xff] }
  0x97   : > { %4294 = vmatprep.mubr.f32.mxu0 %v2225_v19  ;;  %v5442_v19 = vld [vmem:[#allocation5_spill] sm:$0xff] }
  0x98   : > { %4290 = vmatmul.mubr.f32.gmra.mrb[6].mxu1 %v5016_v46  ;;  %v5443_v46 = vld [vmem:[#allocation8_spill] sm:$0xff] }
  0x99   : > { %4378 = vmatprep.mubr.f32.mxu1 %v2999_v60  ;;  %v5444_v60 = vld [vmem:[#allocation9_spill] sm:$0xff] }
  0x9a   : > { %4295 = vmatmul.mubr.f32.vlgmr.msra.gmra.mrb[0].mxu0 %v2235_v48 }
  0x9b   : > { %4307 = vmatpush3.msra.mxu0 %v2306_v12  ;;  %4297 = vmatprep.mubr.f32.mxu0 %v4903_v49  ;;  %v5446_v49 = vld [vmem:[#allocation10_spill] sm:$0xff]  ;;  %v5448_v12 = vld [vmem:[#allocation15_spill] sm:$0xff] }
  0x9c   : > { %4379 = vmatmul.mubr.f32.vlgmr.msra.gmra.mrb[0].mxu1 %v3009_v59  ;;  %4320 = vmatprep.subr.mxu0 %v5132_v61  ;;  %v5447_v59 = vld [vmem:[#allocation14_spill] sm:$0xff] }
  0x9d   : > { %4391 = vmatpush3.msra.mxu1 %v3080_v29  ;;  %4381 = vmatprep.mubr.f32.mxu1 %v5439_v17 }
  0x9e   : > { %4298 = vmatmul.mubr.f32.gmra.mrb[2].mxu0 %v5440_v18  ;;  %4404 = vmatprep.subr.mxu1 %v5139_v4 }
  0x9f   : > { %4300 = vmatprep.mubr.f32.mxu0 %v5441_v38 }
  0xa0   : > { %4382 = vmatmul.mubr.f32.gmra.mrb[2].mxu1 %v5442_v19 }
  0xa1   : > { %4384 = vmatprep.mubr.f32.mxu1 %v5443_v46 }
  0xa2   : > { %4301 = vmatmul.mubr.f32.gmra.mrb[4].mxu0 %v5444_v60 }
  0xa3   : > { %4303 = vmatprep.mubr.f32.mxu0 %v5445_v63 }
  0xa4   : > { %4385 = vmatmul.mubr.f32.gmra.mrb[4].mxu1 %v5446_v49 }
  0xa5   : > { %4387 = vmatprep.mubr.f32.mxu1 %v5447_v59 }
  0xa6   : > { %4304 = vmatmul.mubr.f32.gmra.mrb[6].mxu0 %v5448_v12 }
  0xa7   : > { %4308 = vmatprep.mubr.f32.mxu0 %v5154_v56 }
  0xa8   : > { %4388 = vmatmul.mubr.f32.gmra.mrb[6].mxu1 %v5042_v1 }
  0xa9   : > { %4392 = vmatprep.mubr.f32.mxu1 %v5161_v27 }
  0xaa   : > { %4309 = vmatmul.mubr.f32.vlgmr.msra.gmra.mrb[0].mxu0 %v5167_v7 }
  0xab   : > { %4321 = vmatpush3.msra.mxu0 %v5132_v61  ;;  %4311 = vmatprep.mubr.f32.mxu0 %v4825_v3 }
  0xac   : > { %4393 = vmatmul.mubr.f32.vlgmr.msra.gmra.mrb[0].mxu1 %v5174_v50  ;;  %4334 = vmatprep.subr.mxu0 %v5121_v51 }
  0xad   : > { %4405 = vmatpush3.msra.mxu1 %v5139_v4  ;;  %4395 = vmatprep.mubr.f32.mxu1 %v4827_v8 }
  0xae   : > { %4312 = vmatmul.mubr.f32.gmra.mrb[2].mxu0 %v4829_v9  ;;  %4418 = vmatprep.subr.mxu1 %v5125_v55 }
  0xaf   : > { %4314 = vmatprep.mubr.f32.mxu0 %v4850_v23 }
  0xb0   : > { %4396 = vmatmul.mubr.f32.gmra.mrb[2].mxu1 %v4832_v15 }
  0xb1   : > { %4398 = vmatprep.mubr.f32.mxu1 %v4855_v25 }
  0xb2   : > { %4315 = vmatmul.mubr.f32.gmra.mrb[4].mxu0 %v4857_v26 }
  0xb3   : > { %4317 = vmatprep.mubr.f32.mxu0 %v4935_v13 }
  0xb4   : > { %4399 = vmatmul.mubr.f32.gmra.mrb[4].mxu1 %v4881_v37 }
  0xb5   : > { %4401 = vmatprep.mubr.f32.mxu1 %v4939_v14 }
  0xb6   : > { %4318 = vmatmul.mubr.f32.gmra.mrb[6].mxu0 %v4941_v16 }
  0xb7   : > { %4322 = vmatprep.mubr.f32.mxu0 %v5171_v11 }
  0xb8   : > { %4402 = vmatmul.mubr.f32.gmra.mrb[6].mxu1 %v4997_v10 }
  0xb9   : > { %4406 = vmatprep.mubr.f32.mxu1 %v5178_v2 }
  0xba   : > { %4323 = vmatmul.mubr.f32.vlgmr.msra.gmra.mrb[0].mxu0 %v5182_v5 }
  0xbb   : > { %4335 = vmatpush3.msra.mxu0 %v5121_v51  ;;  %4325 = vmatprep.mubr.f32.mxu0 %v4842_v20  ;;  %v5449_v20 = vand.u32 4294901760, %v5171_v11 }
  0xbc   : > { %4407 = vmatmul.mubr.f32.vlgmr.msra.gmra.mrb[0].mxu1 %v5189_v0  ;;  %4348 = vmatprep.subr.mxu0 %v5145_v42 }
  0xbd   : > { %4419 = vmatpush3.msra.mxu1 %v5125_v55  ;;  %4409 = vmatprep.mubr.f32.mxu1 %v4845_v21  ;;  %v5450_v21 = vand.u32 4294901760, %v5178_v2 }
  0xbe   : > { %4326 = vmatmul.mubr.f32.gmra.mrb[2].mxu0 %v4848_v22  ;;  %4432 = vmatprep.subr.mxu1 %v5151_v54  ;;  %v5451_v22 = vld [vmem:[#allocation6_spill] sm:$0xff] }
  0xbf   : > { %4328 = vmatprep.mubr.f32.mxu0 %v4870_v33 }
  0xc0   : > { %4410 = vmatmul.mubr.f32.gmra.mrb[2].mxu1 %v4853_v24  ;;  %v5452_v24 = vld [vmem:[#allocation11_spill] sm:$0xff] }
  0xc1   : > { %4412 = vmatprep.mubr.f32.mxu1 %v4876_v35 }
  0xc2   : > { %4329 = vmatmul.mubr.f32.gmra.mrb[4].mxu0 %v4879_v36 }
  0xc3   : > { %4331 = vmatprep.mubr.f32.mxu0 %v4956_v31 }
  0xc4   : > { %4413 = vmatmul.mubr.f32.gmra.mrb[4].mxu1 %v4901_v45 }
  0xc5   : > { %4415 = vmatprep.mubr.f32.mxu1 %v4961_v52 }
  0xc6   : > { %4332 = vmatmul.mubr.f32.gmra.mrb[6].mxu0 %v4964_v53 }
  0xc7   : > { %4336 = vmatprep.mubr.f32.mxu0 %v5449_v20 }
  0xc8   : > { %4416 = vmatmul.mubr.f32.gmra.mrb[6].mxu1 %v5008_v47 }
  0xc9   : > { %4420 = vmatprep.mubr.f32.mxu1 %v5450_v21 }
  0xca   : > { %4337 = vmatmul.mubr.f32.vlgmr.msra.gmra.mrb[0].mxu0 %v2233_v57 }
  0xcb   : > { %4349 = vmatpush3.msra.mxu0 %v5145_v42  ;;  %4339 = vmatprep.mubr.f32.mxu0 %v4861_v28  ;;  %v5453_v28 = vld [vmem:[#allocation12_spill] sm:$0xff] }
  0xcc   : > { %4421 = vmatmul.mubr.f32.vlgmr.msra.gmra.mrb[0].mxu1 %v3007_v39  ;;  %4362 = vmatprep.subr.mxu0 %v5121_v51 }
  0xcd   : > { %4433 = vmatpush3.msra.mxu1 %v5151_v54  ;;  %4423 = vmatprep.mubr.f32.mxu1 %v4864_v30  ;;  %v5454_v30 = vld [vmem:[#allocation16_spill] sm:$0xff] }
  0xce   : > { %4340 = vmatmul.mubr.f32.gmra.mrb[2].mxu0 %v4867_v32  ;;  %4446 = vmatprep.subr.mxu1 %v5125_v55 }
  0xcf   : > { %4342 = vmatprep.mubr.f32.mxu0 %v4890_v41 }
  0xd0   : > { %4424 = vmatmul.mubr.f32.gmra.mrb[2].mxu1 %v4873_v34 }
  0xd1   : > { %4426 = vmatprep.mubr.f32.mxu1 %v4895_v43 }
  0xd2   : > { %4343 = vmatmul.mubr.f32.gmra.mrb[4].mxu0 %v4898_v44 }
  0xd3   : > { %4345 = vmatprep.mubr.f32.mxu0 %v4971_v58 }
  0xd4   : > { %4427 = vmatmul.mubr.f32.gmra.mrb[4].mxu1 %v5451_v22 }
  0xd5   : > { %4429 = vmatprep.mubr.f32.mxu1 %v5452_v24 }
  0xd6   : > { %4346 = vmatmul.mubr.f32.gmra.mrb[6].mxu0 %v5453_v28 }
  0xd7   : > { %4350 = vmatprep.mubr.f32.mxu0 %v5154_v56 }
  0xd8   : > { %4430 = vmatmul.mubr.f32.gmra.mrb[6].mxu1 %v5454_v30 }
  0xd9   : > { %4434 = vmatprep.mubr.f32.mxu1 %v5161_v27 }
  0xda   : > { %4351 = vmatmul.mubr.f32.vlgmr.msra.gmra.mrb[0].mxu0 %v5167_v7 }
  0xdb   : > { %4363 = vmatpush3.msra.mxu0 %v5121_v51  ;;  %4353 = vmatprep.mubr.f32.mxu0 %v4825_v3 }
  0xdc   : > { %4435 = vmatmul.mubr.f32.vlgmr.msra.gmra.mrb[0].mxu1 %v5174_v50 }
  0xdd   : > { %4447 = vmatpush3.msra.mxu1 %v5125_v55  ;;  %4437 = vmatprep.mubr.f32.mxu1 %v4827_v8 }
  0xde   : > { %4354 = vmatmul.mubr.f32.gmra.mrb[2].mxu0 %v4829_v9 }
  0xdf   : > { %4356 = vmatprep.mubr.f32.mxu0 %v4850_v23 }
  0xe0   : > { %4438 = vmatmul.mubr.f32.gmra.mrb[2].mxu1 %v4832_v15 }
  0xe1   : > { %4440 = vmatprep.mubr.f32.mxu1 %v4855_v25 }
  0xe2   : > { %4357 = vmatmul.mubr.f32.gmra.mrb[4].mxu0 %v4857_v26 }
  0xe3   : > { %4359 = vmatprep.mubr.f32.mxu0 %v4935_v13 }
  0xe4   : > { %4441 = vmatmul.mubr.f32.gmra.mrb[4].mxu1 %v4881_v37 }
  0xe5   : > { %4443 = vmatprep.mubr.f32.mxu1 %v4939_v14 }
  0xe6   : > { %4360 = vmatmul.mubr.f32.gmra.mrb[6].mxu0 %v4941_v16 }
  0xe7   : > { %4364 = vmatprep.mubr.f32.mxu0 %v5154_v56 }
  0xe8   : > { %4444 = vmatmul.mubr.f32.gmra.mrb[6].mxu1 %v4997_v10 }
  0xe9   : > { %4448 = vmatprep.mubr.f32.mxu1 %v5161_v27 }
  0xea   : > { %4365 = vmatmul.mubr.f32.vlgmr.msra.gmra.mrb[0].mxu0 %v5167_v7 }
  0xeb   : > { %4367 = vmatprep.mubr.f32.mxu0 %v4825_v3  ;;  %v454_v3 = vlaneseq }
  0xec   : > { %4449 = vmatmul.mubr.f32.vlgmr.msra.gmra.mrb[0].mxu1 %v5174_v50 }
  0xed   : > { %4451 = vmatprep.mubr.f32.mxu1 %v4827_v8  ;;  %v455_v8 = vshrl.u32 %v454_v3, 7 }
  0xee   : > { %4368 = vmatmul.mubr.f32.gmra.mrb[2].mxu0 %v4829_v9 }
  0xef   : > { %4370 = vmatprep.mubr.f32.mxu0 %v4850_v23  ;;  %v456_v9 = vadd.s32 8, %v455_v8  ;;  %v460_v32 = vadd.s32 40, %v455_v8  ;;  %v462_v41 = vadd.s32 56, %v455_v8 }
  0xf0   : > { %4452 = vmatmul.mubr.f32.gmra.mrb[2].mxu1 %v4832_v15  ;;  %v458_v15 = vadd.s32 24, %v455_v8 }
  0xf1   : > { %4454 = vmatprep.mubr.f32.mxu1 %v4855_v25  ;;  %v474_v23 = vand.u32 15, %v456_v9  ;;  %v516_v55 = vand.u32 15, %v462_v41 }
  0xf2   : > { %4371 = vmatmul.mubr.f32.gmra.mrb[4].mxu0 %v4857_v26  ;;  %v488_v26 = vand.u32 15, %v458_v15 }
  0xf3   : > { %4373 = vmatprep.mubr.f32.mxu0 %v4935_v13  ;;  %vm560_vm4 = vcmp.ne.s32.totalorder %v474_v23, 15  ;;  %vm5362_vm8 = vcmp.ne.s32.totalorder %v516_v55, 15 }
  0xf4   : > { %4455 = vmatmul.mubr.f32.gmra.mrb[4].mxu1 %v4881_v37  ;;  %v502_v37 = vand.u32 15, %v460_v32  ;;  %vm5337_vm6 = vcmp.ne.s32.totalorder %v488_v26, 15 }
  0xf5   : > { %4457 = vmatprep.mubr.f32.mxu1 %v4939_v14 }
  0xf6   : > { %4374 = vmatmul.mubr.f32.gmra.mrb[6].mxu0 %v4941_v16  ;;  %vm5349_vm7 = vcmp.ne.s32.totalorder %v502_v37, 15 }
  0xf8   : > { %4458 = vmatmul.mubr.f32.gmra.mrb[6].mxu1 %v4997_v10 }
 0x1bd   : > { %v4366_v25 = vpop.f32.mrb[0].mxu0 }
 0x1be   : > { %v2856_v33 = vpop.f32.mrb[1].mxu0 }
 0x1bf   : > { %v4450_v34 = vpop.f32.mrb[0].mxu1 }
 0x1c0   : > { %v3693_v35 = vsel %vm560_vm4, %v4450_v34, 0.0  ;;  %v3630_v36 = vpop.f32.mrb[1].mxu1 }
 0x1c1   : > { %v3701_v43 = vadd.f32 %v4366_v25, %v3693_v35  ;;  %v3700_v44 = vadd.f32 %v3630_v36, %v2856_v33  ;;  %v4369_v45 = vpop.f32.mrb[2].mxu0 }
 0x1c2   : > { %v2868_v13 = vpop.f32.mrb[3].mxu0 }
 0x1c3   : > { %3710 = vst.msk [vmem:[%s5335_s20 + $0x8] sm:$0xff] %vm3708_vm5, %v3701_v43  ;;  %v3718_v14 = vsel %vm3708_vm5, %v3701_v43, 0.0  ;;  %v3739_v16 = vmul.f32 %v3701_v43, %v3701_v43  ;;  %3709 = vst.msk [vmem:[%s5335_s20] sm:$0xff] %vm3708_vm5, %v3700_v44  ;;  %v3717_v31 = vsel %vm3708_vm5, %v3700_v44, 0.0  ;;  %v3738_v52 = vmul.f32 %v3700_v44, %v3700_v44  ;;  %v4453_v53 = vpop.f32.mrb[2].mxu1 }
 0x1c4   : > { %v3719_v58 = vadd.f32 %v3718_v14, %v3717_v31  ;;  %v3695_v10 = vsel %vm5337_vm6, %v4453_v53, 0.0  ;;  %v3642_v47 = vpop.f32.mrb[3].mxu1 }
 0x1c5   : > { %v3747_v61 = vsel %vm3708_vm5, %v3739_v16, 0.0  ;;  %v3746_v4 = vsel %vm3708_vm5, %v3738_v52, 0.0  ;;  %v3703_v42 = vadd.f32 %v4369_v45, %v3695_v10  ;;  %v3702_v54 = vadd.f32 %v3642_v47, %v2868_v13  ;;  %v4372_v56 = vpop.f32.mrb[4].mxu0 }
 0x1c6   : > { %v3748_v27 = vadd.f32 %v3747_v61, %v3746_v4  ;;  %v2880_v7 = vpop.f32.mrb[5].mxu0 }
 0x1c7   : > { %3712 = vst.msk [vmem:[%s5335_s20 + $0x18] sm:$0xff] %vm3708_vm5, %v3703_v42  ;;  %v3741_v11 = vmul.f32 %v3703_v42, %v3703_v42  ;;  %3711 = vst.msk [vmem:[%s5335_s20 + $0x10] sm:$0xff] %vm3708_vm5, %v3702_v54  ;;  %v3720_v50 = vsel %vm3708_vm5, %v3702_v54, 0.0  ;;  %v3740_v2 = vmul.f32 %v3702_v54, %v3702_v54  ;;  %v4456_v29 = vpop.f32.mrb[4].mxu1  ;;  %v3722_v57 = vsel %vm3708_vm5, %v3703_v42, 0.0 }
 0x1c8   : > { %v3721_v5 = vadd.f32 %v3720_v50, %v3719_v58  ;;  %v3697_v40 = vsel %vm5349_vm7, %v4456_v29, 0.0  ;;  %v3654_v0 = vpop.f32.mrb[5].mxu1 }
 0x1c9   : > { %v3749_v62 = vsel %vm3708_vm5, %v3740_v2, 0.0  ;;  %v3705_v39 = vadd.f32 %v4372_v56, %v3697_v40  ;;  %v3704_v6 = vadd.f32 %v3654_v0, %v2880_v7  ;;  %v4375_v17 = vpop.f32.mrb[6].mxu0  ;;  %v3751_v46 = vsel %vm3708_vm5, %v3741_v11, 0.0 }
 0x1ca   : > { %v3750_v18 = vadd.f32 %v3749_v62, %v3748_v27  ;;  %v3723_v38 = vadd.f32 %v3722_v57, %v3721_v5  ;;  %v2892_v19 = vpop.f32.mrb[7].mxu0 }
 0x1cb   : > { %3714 = vst.msk [vmem:[%s5335_s20 + $0x28] sm:$0xff] %vm3708_vm5, %v3705_v39  ;;  %v3743_v60 = vmul.f32 %v3705_v39, %v3705_v39  ;;  %3713 = vst.msk [vmem:[%s5335_s20 + $0x20] sm:$0xff] %vm3708_vm5, %v3704_v6  ;;  %v3724_v63 = vsel %vm3708_vm5, %v3704_v6, 0.0  ;;  %v3742_v49 = vmul.f32 %v3704_v6, %v3704_v6  ;;  %v4459_v59 = vpop.f32.mrb[6].mxu1  ;;  %v3726_v24 = vsel %vm3708_vm5, %v3705_v39, 0.0 }
 0x1cc   : > { %v3725_v12 = vadd.f32 %v3724_v63, %v3723_v38  ;;  %v3752_v20 = vadd.f32 %v3751_v46, %v3750_v18  ;;  %v3699_v21 = vsel %vm5362_vm8, %v4459_v59, 0.0  ;;  %v3666_v22 = vpop.f32.mrb[7].mxu1 }
 0x1cd   : > { %v3753_v28 = vsel %vm3708_vm5, %v3742_v49, 0.0  ;;  %v3707_v30 = vadd.f32 %v4375_v17, %v3699_v21  ;;  %v3706_v3 = vadd.f32 %v3666_v22, %v2892_v19  ;;  %v3755_v23 = vsel %vm3708_vm5, %v3743_v60, 0.0 }
 0x1ce   : > { %v3754_v8 = vadd.f32 %v3753_v28, %v3752_v20  ;;  %v3727_v9 = vadd.f32 %v3726_v24, %v3725_v12 }
 0x1cf   : > { %3716 = vst.msk [vmem:[%s5335_s20 + $0x38] sm:$0xff] %vm3708_vm5, %v3707_v30  ;;  %v3745_v15 = vmul.f32 %v3707_v30, %v3707_v30  ;;  %3715 = vst.msk [vmem:[%s5335_s20 + $0x30] sm:$0xff] %vm3708_vm5, %v3706_v3  ;;  %v3728_v32 = vsel %vm3708_vm5, %v3706_v3, 0.0  ;;  %v3744_v25 = vmul.f32 %v3706_v3, %v3706_v3  ;;  %v3730_v34 = vsel %vm3708_vm5, %v3707_v30, 0.0 }
 0x1d0   : > { %v3729_v26 = vadd.f32 %v3728_v32, %v3727_v9  ;;  %v3756_v33 = vadd.f32 %v3755_v23, %v3754_v8 }
 0x1d1   : > { %v3757_v35 = vsel %vm3708_vm5, %v3744_v25, 0.0  ;;  %v3759_v41 = vsel %vm3708_vm5, %v3745_v15, 0.0 }
 0x1d2   : > { %v3731_v36 = vadd.f32 %v3730_v34, %v3729_v26  ;;  %v3758_v37 = vadd.f32 %v3757_v35, %v3756_v33 }
 0x1d4   : > { %v3732_v43 = vrot.slane %v3731_v36, 4  ;;  %v3760_v44 = vadd.f32 %v3759_v41, %v3758_v37 }
 0x1d6   : > { %v3733_v45 = vadd.f32 %v3732_v43, %v3731_v36  ;;  %v3761_v1 = vrot.slane %v3760_v44, 4 }
 0x1d8   : > { %v3734_v13 = vrot.slane %v3733_v45, 2  ;;  %v3762_v14 = vadd.f32 %v3761_v1, %v3760_v44 }
 0x1da   : > { %v3735_v16 = vadd.f32 %v3734_v13, %v3733_v45  ;;  %v3763_v31 = vrot.slane %v3762_v14, 2 }
 0x1dc   : > { %v3736_v52 = vrot.slane %v3735_v16, 1  ;;  %v3764_v53 = vadd.f32 %v3763_v31, %v3762_v14 }
 0x1de   : > { %v3765_v58 = vrot.slane %v3764_v53, 1  ;;  %v3737_v10 = vadd.f32 %v3736_v52, %v3735_v16 }
 0x1e0   : > { %v3766_v47 = vadd.f32 %v3765_v58, %v3764_v53 }
 0x1e2   : > { %v3768_v51 = vsel %vm3767_vm9, %v3737_v10, %v3766_v47 }
 0x1e3   : > { %3770 = vst.msk [vmem:[%s372_s22] sm:$0x3] %vm3769_vm10, %v3768_v51 }
 0x1e4 PF: > { %s19_s27 = sadd.s32 1, %s4651_s27  }
 0x1e5   : > { %p16_p9 = scmp.ge.s32.totalorder %s19_s27, 10  }
 0x1e7   :  { %18 = sbr.rel (!%p16_p9) target bundleno = 1 (0x1), region = 93 }

</bundles_post_ra>
